<compile_context>
chip_gen: v7x
topology: tpu7x:2x2x1
jax: 0.10.0
libtpu: 0.0.40
codegen_flags: <defaults>
</compile_context>

<pallas_src>
import functools

import numpy as np

import jax
import jax.numpy as jnp
from jax.experimental import pallas as pl
from jax.experimental.pallas import tpu as pltpu


# ----------------------------------------------------------------------------
# helpers
# ----------------------------------------------------------------------------
def _round_up(v, m):
    return ((v + m - 1) // m) * m


def _pick_tile_n(n_pad):
    # keep >= 2 programs along the parallel axis when possible (megacore / v7x)
    for t in (256, 128, 64, 32, 16, 8):
        if n_pad % t == 0 and (n_pad // t) >= 2:
            return t
    return n_pad


def _pick_tile_k(n_pad):
    for t in (512, 256, 128):
        if n_pad % t == 0:
            return t
    return n_pad


# ----------------------------------------------------------------------------
# KENN unary clause enhancement (compile-time constant clauses)
# ----------------------------------------------------------------------------
def _kenn_enhance(z, signs_np, cw_layers):
    """Apply num_kenn_layers rounds of unary clause enhancement to z (f32).

    signs_np : numpy (num_clauses, out_channels) with entries in {-1, 0, +1}
    cw_layers: list (one per KENN layer) of numpy (num_clauses,) clause weights
    """
    c_pad = z.shape[1]
    lane = jax.lax.broadcasted_iota(jnp.int32, (1, c_pad), 1)

    # Build per-clause sign rows / masks once (constants, hoisted out of the
    # per-layer loop; padded feature lanes never participate).
    clause_consts = []
    for c in range(signs_np.shape[0]):
        idxs = np.nonzero(signs_np[c])[0]
        if idxs.size == 0:          # guard: empty clause would give denom == 0
            continue
        s_row = jnp.zeros((1, c_pad), jnp.float32)
        for j in idxs:
            s_row = s_row + float(signs_np[c, j]) * (lane == int(j)).astype(
                jnp.float32)
        clause_consts.append((c, s_row, s_row != 0.0))

    for cw in cw_layers:            # one KENN layer per clause-weight vector
        delta = jnp.zeros_like(z)
        for c, s_row, mask in clause_consts:
            lit = z * s_row                              # signed literals
            lit_m = jnp.where(mask, lit, -1e30)
            m = jnp.max(lit_m, axis=-1, keepdims=True)
            e = jnp.where(mask, jnp.exp(lit_m - m), 0.0)
            denom = jnp.sum(e, axis=-1, keepdims=True)
            inv = pl.reciprocal(jnp.maximum(denom, 1e-30), approx=True)
            soft = e * inv
            delta = delta + float(cw[c]) * (s_row * soft)
        z = z + delta
    return z


# ----------------------------------------------------------------------------
# Fused SAGE layer kernel:  K-tiled mean aggregation + fused projection
#                           (+ optional ReLU, + optional fused KENN epilogue)
# ----------------------------------------------------------------------------
def sage_layer_kernel(a_ref, xk_ref, xi_ref, wcat_ref, b_ref, o_ref, acc_ref,
                      *, apply_relu, kenn_signs, kenn_cw):
    """Grid = (node tiles [parallel], neighbor K tiles [arbitrary]).

    a_ref    : (TN, TK)           bf16  row-normalized adjacency tile
    xk_ref   : (TK, Fin_pad)      bf16  neighbor features (K tile)
    xi_ref   : (TN, Fin_pad)      bf16  self features of this node tile
    wcat_ref : (2*Fin_pad, Fout)  bf16  [Wl_bn ; Wr_bn] (BN folded)
    b_ref    : (1, Fout)          f32   folded bias
    o_ref    : (TN, Fout)               output tile
    acc_ref  : (TN, Fin_pad)      f32   neighbor-aggregation accumulator
    """
    k = pl.program_id(1)

    @pl.when(k == 0)
    def _():
        acc_ref[...] = jnp.zeros_like(acc_ref)

    # accumulate mean-aggregated neighbor features over K tiles of nodes
    acc_ref[...] += jnp.dot(a_ref[...], xk_ref[...],
                            preferred_element_type=jnp.float32)

    @pl.when(k == pl.num_programs(1) - 1)
    def _():
        # single fused projection matmul: [agg | x_self] @ [Wl ; Wr]
        agg = acc_ref[...].astype(wcat_ref.dtype)
        both = jnp.concatenate([agg, xi_ref[...]], axis=1)
        out = jnp.dot(both, wcat_ref[...], preferred_element_type=jnp.float32)
        out = out + b_ref[...]
        if apply_relu:
            out = jnp.maximum(out, 0.0)        # eval BN already folded in W/b
            # dropout: eval mode -> identity
        if kenn_signs is not None:
            out = _kenn_enhance(out, kenn_signs, kenn_cw)
        o_ref[...] = out.astype(o_ref.dtype)


def sage_layer(A, x, w_cat, b, *, apply_relu, kenn_signs, kenn_cw, out_dtype):
    n_pad = A.shape[0]
    fin_pad = x.shape[1]
    fout_pad = w_cat.shape[1]
    tile_n = _pick_tile_n(n_pad)
    tile_k = _pick_tile_k(n_pad)

    kernel = functools.partial(sage_layer_kernel, apply_relu=apply_relu,
                               kenn_signs=kenn_signs, kenn_cw=kenn_cw)
    return pl.pallas_call(
        kernel,
        out_shape=jax.ShapeDtypeStruct((n_pad, fout_pad), out_dtype),
        grid=(n_pad // tile_n, n_pad // tile_k),
        in_specs=[
            pl.BlockSpec((tile_n, tile_k), lambda i, k: (i, k)),      # A tile
            pl.BlockSpec((tile_k, fin_pad), lambda i, k: (k, 0)),     # X (K)
            pl.BlockSpec((tile_n, fin_pad), lambda i, k: (i, 0)),     # X (self)
            pl.BlockSpec((2 * fin_pad, fout_pad), lambda i, k: (0, 0)),  # Wcat
            pl.BlockSpec((1, fout_pad), lambda i, k: (0, 0)),            # bias
        ],
        out_specs=pl.BlockSpec((tile_n, fout_pad), lambda i, k: (i, 0)),
        scratch_shapes=[pltpu.VMEM((tile_n, fin_pad), jnp.float32)],
        compiler_params=pltpu.CompilerParams(
            dimension_semantics=("parallel", "arbitrary")),
    )(A, x, x, w_cat, b)


# ----------------------------------------------------------------------------
# Parameters (BN folded, padded, bf16) + synthetic clauses
# ----------------------------------------------------------------------------
def init_conv_params(key, in_channels, hidden_channels, out_channels,
                     num_layers, bn_eps=1e-5):
    dims = [in_channels] + [hidden_channels] * (num_layers - 1) + [out_channels]
    layers = []
    for li in range(num_layers):
        fin, fout = dims[li], dims[li + 1]
        key, k1, k2 = jax.random.split(key, 3)
        Wl = jax.random.normal(k1, (fin, fout), jnp.float32) * 0.1
        Wr = jax.random.normal(k2, (fin, fout), jnp.float32) * 0.1
        b = jnp.zeros((fout,), jnp.float32)

        # eval-mode BatchNorm1d (running mean=0, var=1, gamma=1, beta=0) folded
        # into the weights; the final layer has no BN.
        if li < num_layers - 1:
            scale = jnp.full((fout,), 1.0 / np.sqrt(1.0 + bn_eps), jnp.float32)
            shift = jnp.zeros((fout,), jnp.float32)
        else:
            scale = jnp.ones((fout,), jnp.float32)
            shift = jnp.zeros((fout,), jnp.float32)
        Wl_f = Wl * scale[None, :]
        Wr_f = Wr * scale[None, :]
        b_f = b * scale + shift

        # lane-dense padding to multiples of 128, concat [Wl ; Wr], cast bf16
        fin_p = _round_up(fin, 128)
        fout_p = _round_up(fout, 128)
        wl_p = jnp.zeros((fin_p, fout_p), jnp.float32).at[:fin, :fout].set(Wl_f)
        wr_p = jnp.zeros((fin_p, fout_p), jnp.float32).at[:fin, :fout].set(Wr_f)
        w_cat = jnp.concatenate([wl_p, wr_p], axis=0).astype(jnp.bfloat16)
        b_p = jnp.zeros((1, fout_p), jnp.float32).at[0, :fout].set(b_f)
        layers.append((w_cat, b_p))
    return layers


def make_synthetic_clauses(out_channels, num_kenn_layers, clause_weight=0.5):
    """Deterministic stand-in for the knowledge file (unary clauses only)."""
    num_clauses = 3
    signs = np.zeros((num_clauses, out_channels), np.float32)
    lits = [[(0, -1.0), (1, 1.0)],
            [(2, -1.0), (3, 1.0), (4, 1.0)],
            [(5, -1.0), (6, 1.0), (7, 1.0)]]
    for c, lit in enumerate(lits):
        for j, s in lit:
            if j < out_channels:
                signs[c, j] = s
    cw = [np.full((num_clauses,), clause_weight, np.float32)
          for _ in range(num_kenn_layers)]
    return signs, cw


# ----------------------------------------------------------------------------
# Forward
# ----------------------------------------------------------------------------
def build_adjacency(edge_index, num_nodes):
    src, dst = edge_index[0], edge_index[1]
    A = jnp.zeros((num_nodes, num_nodes), jnp.float32)
    A = A.at[dst, src].add(1.0)
    deg = A.sum(axis=1, keepdims=True)
    return A / jnp.maximum(deg, 1.0)     # mean aggregation, 0 for isolated


def make_kenn_sage_forward(kenn_signs, kenn_clause_weights, out_channels):
    kenn_signs = np.asarray(kenn_signs, np.float32)
    kenn_cw = [np.asarray(w, np.float32) for w in kenn_clause_weights]

    def forward(x, edge_index, relations, conv_params):
        del relations   # TODO(synk): binary clauses over edges not implemented
        N = x.shape[0]
        n_pad = _round_up(N, 128)

        A = build_adjacency(edge_index, N)
        A_p = jnp.zeros((n_pad, n_pad), jnp.bfloat16)
        A_p = A_p.at[:N, :N].set(A.astype(jnp.bfloat16))

        fin0_pad = conv_params[0][0].shape[0] // 2
        h = jnp.zeros((n_pad, fin0_pad), jnp.bfloat16)
        h = h.at[:N, :x.shape[1]].set(x.astype(jnp.bfloat16))

        num_layers = len(conv_params)
        for li, (w_cat, b) in enumerate(conv_params):
            is_last = li == num_layers - 1
            h = sage_layer(
                A_p, h, w_cat, b,
                apply_relu=not is_last,
                kenn_signs=kenn_signs if is_last else None,
                kenn_cw=kenn_cw if is_last else None,
                out_dtype=jnp.float32 if is_last else jnp.bfloat16)
        return h[:N, :out_channels]

    return forward


# ----------------------------------------------------------------------------
if __name__ == "__main__":
    N = 128              # nodes
    E = 512              # edges
    IN_CH = 16
    HIDDEN = 32
    OUT_CH = 8
    NUM_LAYERS = 3
    NUM_KENN_LAYERS = 2

    key = jax.random.PRNGKey(0)
    kx, ke_src, ke_dst, kr, kp = jax.random.split(key, 5)

    x = jax.random.normal(kx, (N, IN_CH), jnp.float32)
    edge_index = jnp.stack([
        jax.random.randint(ke_src, (E,), 0, N),
        jax.random.randint(ke_dst, (E,), 0, N),
    ], axis=0)
    relations = jax.random.normal(kr, (E, 2), jnp.float32)  # unused (see TODO)

    conv_params = init_conv_params(kp, IN_CH, HIDDEN, OUT_CH, NUM_LAYERS)
    kenn_signs, kenn_cw = make_synthetic_clauses(OUT_CH, NUM_KENN_LAYERS)

    forward = jax.jit(make_kenn_sage_forward(kenn_signs, kenn_cw, OUT_CH))
    out = forward(x, edge_index, relations, conv_params)
    jax.block_until_ready(out)
    assert out.shape == (N, OUT_CH) and out.dtype == jnp.float32
    assert bool(jnp.all(jnp.isfinite(out)))
    print("KERNEL_OK")
</pallas_src>

<mosaic_0001>
module attributes {stable_mosaic.version = 11 : i64} {
  func.func private @main(%arg0: i32) attributes {dimension_semantics = [#tpu.dimension_semantics<core_parallel>], iteration_bounds = array<i64: 2>, tpu.core_type = #tpu.core_type<sc_scalar_subcore>, window_params = []} {
    return
  }
}

module attributes {stable_mosaic.version = 11 : i64} {
  func.func private @main(%arg0: i32) attributes {dimension_semantics = [#tpu.dimension_semantics<core_parallel>], iteration_bounds = array<i64: 2>, tpu.core_type = #tpu.core_type<sc_scalar_subcore>, window_params = []} {
    return
  }
}

module attributes {stable_mosaic.version = 11 : i64} {
  func.func @sage_layer_kernel(%arg0: i32, %arg1: i32, %arg2: memref<64x128xbf16, #tpu.memory_space<vmem>>, %arg3: memref<128x128xbf16, #tpu.memory_space<vmem>>, %arg4: memref<64x128xbf16, #tpu.memory_space<vmem>>, %arg5: memref<256x128xbf16, #tpu.memory_space<vmem>>, %arg6: memref<1x128xf32, #tpu.memory_space<vmem>>, %arg7: memref<64x128xbf16, #tpu.memory_space<vmem>>, %arg8: memref<64x128xf32, #tpu.memory_space<vmem>>) attributes {dimension_semantics = [#tpu.dimension_semantics<parallel>, #tpu.dimension_semantics<arbitrary>], iteration_bounds = array<i64: 2, 1>, scalar_prefetch = 0 : i64, scratch_operands = 1 : i64, tpu.core_type = #tpu.core_type<tc>, window_params = [{transform_indices = @transform_0, window_bounds = array<i64: 64, 128>}, {transform_indices = @transform_1, window_bounds = array<i64: 128, 128>}, {transform_indices = @transform_2, window_bounds = array<i64: 64, 128>}, {pipeline_mode = #tpu.pipeline_mode<synchronous>, transform_indices = @transform_3, window_bounds = array<i64: 256, 128>}, {pipeline_mode = #tpu.pipeline_mode<synchronous>, transform_indices = @transform_4, window_bounds = array<i64: 1, 128>}, {transform_indices = @transform_5, window_bounds = array<i64: 64, 128>}]} {
    %c0_i32 = arith.constant 0 : i32
    %0 = arith.cmpi eq, %arg1, %c0_i32 : i32
    %1 = arith.extui %0 : i1 to i32
    %c0_i32_0 = arith.constant 0 : i32
    %2 = arith.cmpi ne, %1, %c0_i32_0 : i32
    scf.if %2 {
      %cst_10 = arith.constant 0.000000e+00 : f32
      %12 = vector.broadcast %cst_10 : f32 to vector<64x128xf32>
      %c0_11 = arith.constant 0 : index
      %c0_12 = arith.constant 0 : index
      %13 = vector.load %arg8[%c0_11, %c0_12] : memref<64x128xf32, #tpu.memory_space<vmem>>, vector<64x128xf32>
      tpu.vector_store %arg8[%c0_11, %c0_12], %12 {strides = array<i32>} : memref<64x128xf32, #tpu.memory_space<vmem>>, vector<64x128xf32>,
    } else {
    }
    %c0 = arith.constant 0 : index
    %c0_1 = arith.constant 0 : index
    %3 = vector.load %arg8[%c0, %c0_1] : memref<64x128xf32, #tpu.memory_space<vmem>>, vector<64x128xf32>
    %c0_2 = arith.constant 0 : index
    %c0_3 = arith.constant 0 : index
    %4 = vector.load %arg2[%c0_2, %c0_3] : memref<64x128xbf16, #tpu.memory_space<vmem>>, vector<64x128xbf16>
    %c0_4 = arith.constant 0 : index
    %c0_5 = arith.constant 0 : index
    %5 = vector.load %arg3[%c0_4, %c0_5] : memref<128x128xbf16, #tpu.memory_space<vmem>>, vector<128x128xbf16>
    %cst = arith.constant dense<0.000000e+00> : vector<64x128xf32>
    %6 = tpu.matmul %4, %5, %cst {dimension_numbers = #tpu.dot_dimension_numbers<[1], [0], [0], [1], [0, 0, 1, 1], [], []>} : vector<64x128xbf16>, vector<128x128xbf16>, vector<64x128xf32> -> vector<64x128xf32>
    %7 = arith.addf %3, %6 : vector<64x128xf32>
    %c0_6 = arith.constant 0 : index
    %c0_7 = arith.constant 0 : index
    %8 = vector.load %arg8[%c0_6, %c0_7] : memref<64x128xf32, #tpu.memory_space<vmem>>, vector<64x128xf32>
    tpu.vector_store %arg8[%c0_6, %c0_7], %7 {strides = array<i32>} : memref<64x128xf32, #tpu.memory_space<vmem>>, vector<64x128xf32>,
    %c0_i32_8 = arith.constant 0 : i32
    %9 = arith.cmpi eq, %arg1, %c0_i32_8 : i32
    %10 = arith.extui %9 : i1 to i32
    %c0_i32_9 = arith.constant 0 : i32
    %11 = arith.cmpi ne, %10, %c0_i32_9 : i32
    scf.if %11 {
      %c0_10 = arith.constant 0 : index
      %c0_11 = arith.constant 0 : index
      %12 = vector.load %arg8[%c0_10, %c0_11] : memref<64x128xf32, #tpu.memory_space<vmem>>, vector<64x128xf32>
      %13 = arith.truncf %12 : vector<64x128xf32> to vector<64x128xbf16>
      %c0_12 = arith.constant 0 : index
      %c0_13 = arith.constant 0 : index
      %14 = vector.load %arg4[%c0_12, %c0_13] : memref<64x128xbf16, #tpu.memory_space<vmem>>, vector<64x128xbf16>
      %15 = tpu.concatenate %13, %14 in 1 : vector<64x128xbf16>, vector<64x128xbf16> -> vector<64x256xbf16>
      %c0_14 = arith.constant 0 : index
      %c0_15 = arith.constant 0 : index
      %16 = vector.load %arg5[%c0_14, %c0_15] : memref<256x128xbf16, #tpu.memory_space<vmem>>, vector<256x128xbf16>
      %cst_16 = arith.constant dense<0.000000e+00> : vector<64x128xf32>
      %17 = tpu.matmul %15, %16, %cst_16 {dimension_numbers = #tpu.dot_dimension_numbers<[1], [0], [0], [1], [0, 0, 1, 1], [], []>} : vector<64x256xbf16>, vector<256x128xbf16>, vector<64x128xf32> -> vector<64x128xf32>
      %c0_17 = arith.constant 0 : index
      %c0_18 = arith.constant 0 : index
      %18 = vector.load %arg6[%c0_17, %c0_18] : memref<1x128xf32, #tpu.memory_space<vmem>>, vector<1x128xf32>
      %19 = vector.broadcast %18 : vector<1x128xf32> to vector<64x128xf32>
      %20 = arith.addf %17, %19 : vector<64x128xf32>
      %cst_19 = arith.constant 0.000000e+00 : f32
      %21 = vector.broadcast %cst_19 : f32 to vector<64x128xf32>
      %22 = arith.maximumf %20, %21 : vector<64x128xf32>
      %23 = arith.truncf %22 : vector<64x128xf32> to vector<64x128xbf16>
      %c0_20 = arith.constant 0 : index
      %c0_21 = arith.constant 0 : index
      %24 = vector.load %arg7[%c0_20, %c0_21] : memref<64x128xbf16, #tpu.memory_space<vmem>>, vector<64x128xbf16>
      tpu.vector_store %arg7[%c0_20, %c0_21], %23 {strides = array<i32>} : memref<64x128xbf16, #tpu.memory_space<vmem>>, vector<64x128xbf16>,
    } else {
    }
    return
  }
  func.func @transform_0(%arg0: i32, %arg1: i32) -> (i32, i32) {
    %c0_i32 = arith.constant 0 : i32
    return %arg0, %arg1 : i32, i32
  }
  func.func @transform_1(%arg0: i32, %arg1: i32) -> (i32, i32) {
    %c0_i32 = arith.constant 0 : i32
    %c0_i32_0 = arith.constant 0 : i32
    return %arg1, %c0_i32 : i32, i32
  }
  func.func @transform_2(%arg0: i32, %arg1: i32) -> (i32, i32) {
    %c0_i32 = arith.constant 0 : i32
    %c0_i32_0 = arith.constant 0 : i32
    return %arg0, %c0_i32 : i32, i32
  }
  func.func @transform_3(%arg0: i32, %arg1: i32) -> (i32, i32) {
    %c0_i32 = arith.constant 0 : i32
    %c0_i32_0 = arith.constant 0 : i32
    %c0_i32_1 = arith.constant 0 : i32
    return %c0_i32, %c0_i32_0 : i32, i32
  }
  func.func @transform_4(%arg0: i32, %arg1: i32) -> (i32, i32) {
    %c0_i32 = arith.constant 0 : i32
    %c0_i32_0 = arith.constant 0 : i32
    %c0_i32_1 = arith.constant 0 : i32
    return %c0_i32, %c0_i32_0 : i32, i32
  }
  func.func @transform_5(%arg0: i32, %arg1: i32) -> (i32, i32) {
    %c0_i32 = arith.constant 0 : i32
    %c0_i32_0 = arith.constant 0 : i32
    return %arg0, %c0_i32 : i32, i32
  }
}

module attributes {stable_mosaic.version = 11 : i64} {
  func.func @sage_layer_kernel(%arg0: i32, %arg1: i32, %arg2: memref<64x128xbf16, #tpu.memory_space<vmem>>, %arg3: memref<128x128xbf16, #tpu.memory_space<vmem>>, %arg4: memref<64x128xbf16, #tpu.memory_space<vmem>>, %arg5: memref<256x128xbf16, #tpu.memory_space<vmem>>, %arg6: memref<1x128xf32, #tpu.memory_space<vmem>>, %arg7: memref<64x128xf32, #tpu.memory_space<vmem>>, %arg8: memref<64x128xf32, #tpu.memory_space<vmem>>) attributes {dimension_semantics = [#tpu.dimension_semantics<parallel>, #tpu.dimension_semantics<arbitrary>], iteration_bounds = array<i64: 2, 1>, scalar_prefetch = 0 : i64, scratch_operands = 1 : i64, tpu.core_type = #tpu.core_type<tc>, window_params = [{transform_indices = @transform_0, window_bounds = array<i64: 64, 128>}, {transform_indices = @transform_1, window_bounds = array<i64: 128, 128>}, {transform_indices = @transform_2, window_bounds = array<i64: 64, 128>}, {pipeline_mode = #tpu.pipeline_mode<synchronous>, transform_indices = @transform_3, window_bounds = array<i64: 256, 128>}, {pipeline_mode = #tpu.pipeline_mode<synchronous>, transform_indices = @transform_4, window_bounds = array<i64: 1, 128>}, {transform_indices = @transform_5, window_bounds = array<i64: 64, 128>}]} {
    %c0_i32 = arith.constant 0 : i32
    %0 = arith.cmpi eq, %arg1, %c0_i32 : i32
    %1 = arith.extui %0 : i1 to i32
    %c0_i32_0 = arith.constant 0 : i32
    %2 = arith.cmpi ne, %1, %c0_i32_0 : i32
    scf.if %2 {
      %cst_10 = arith.constant 0.000000e+00 : f32
      %12 = vector.broadcast %cst_10 : f32 to vector<64x128xf32>
      %c0_11 = arith.constant 0 : index
      %c0_12 = arith.constant 0 : index
      %13 = vector.load %arg8[%c0_11, %c0_12] : memref<64x128xf32, #tpu.memory_space<vmem>>, vector<64x128xf32>
      tpu.vector_store %arg8[%c0_11, %c0_12], %12 {strides = array<i32>} : memref<64x128xf32, #tpu.memory_space<vmem>>, vector<64x128xf32>,
    } else {
    }
    %c0 = arith.constant 0 : index
    %c0_1 = arith.constant 0 : index
    %3 = vector.load %arg8[%c0, %c0_1] : memref<64x128xf32, #tpu.memory_space<vmem>>, vector<64x128xf32>
    %c0_2 = arith.constant 0 : index
    %c0_3 = arith.constant 0 : index
    %4 = vector.load %arg2[%c0_2, %c0_3] : memref<64x128xbf16, #tpu.memory_space<vmem>>, vector<64x128xbf16>
    %c0_4 = arith.constant 0 : index
    %c0_5 = arith.constant 0 : index
    %5 = vector.load %arg3[%c0_4, %c0_5] : memref<128x128xbf16, #tpu.memory_space<vmem>>, vector<128x128xbf16>
    %cst = arith.constant dense<0.000000e+00> : vector<64x128xf32>
    %6 = tpu.matmul %4, %5, %cst {dimension_numbers = #tpu.dot_dimension_numbers<[1], [0], [0], [1], [0, 0, 1, 1], [], []>} : vector<64x128xbf16>, vector<128x128xbf16>, vector<64x128xf32> -> vector<64x128xf32>
    %7 = arith.addf %3, %6 : vector<64x128xf32>
    %c0_6 = arith.constant 0 : index
    %c0_7 = arith.constant 0 : index
    %8 = vector.load %arg8[%c0_6, %c0_7] : memref<64x128xf32, #tpu.memory_space<vmem>>, vector<64x128xf32>
    tpu.vector_store %arg8[%c0_6, %c0_7], %7 {strides = array<i32>} : memref<64x128xf32, #tpu.memory_space<vmem>>, vector<64x128xf32>,
    %c0_i32_8 = arith.constant 0 : i32
    %9 = arith.cmpi eq, %arg1, %c0_i32_8 : i32
    %10 = arith.extui %9 : i1 to i32
    %c0_i32_9 = arith.constant 0 : i32
    %11 = arith.cmpi ne, %10, %c0_i32_9 : i32
    scf.if %11 {
      %c0_10 = arith.constant 0 : index
      %c0_11 = arith.constant 0 : index
      %12 = vector.load %arg8[%c0_10, %c0_11] : memref<64x128xf32, #tpu.memory_space<vmem>>, vector<64x128xf32>
      %13 = arith.truncf %12 : vector<64x128xf32> to vector<64x128xbf16>
      %c0_12 = arith.constant 0 : index
      %c0_13 = arith.constant 0 : index
      %14 = vector.load %arg4[%c0_12, %c0_13] : memref<64x128xbf16, #tpu.memory_space<vmem>>, vector<64x128xbf16>
      %15 = tpu.concatenate %13, %14 in 1 : vector<64x128xbf16>, vector<64x128xbf16> -> vector<64x256xbf16>
      %c0_14 = arith.constant 0 : index
      %c0_15 = arith.constant 0 : index
      %16 = vector.load %arg5[%c0_14, %c0_15] : memref<256x128xbf16, #tpu.memory_space<vmem>>, vector<256x128xbf16>
      %cst_16 = arith.constant dense<0.000000e+00> : vector<64x128xf32>
      %17 = tpu.matmul %15, %16, %cst_16 {dimension_numbers = #tpu.dot_dimension_numbers<[1], [0], [0], [1], [0, 0, 1, 1], [], []>} : vector<64x256xbf16>, vector<256x128xbf16>, vector<64x128xf32> -> vector<64x128xf32>
      %c0_17 = arith.constant 0 : index
      %c0_18 = arith.constant 0 : index
      %18 = vector.load %arg6[%c0_17, %c0_18] : memref<1x128xf32, #tpu.memory_space<vmem>>, vector<1x128xf32>
      %19 = vector.broadcast %18 : vector<1x128xf32> to vector<64x128xf32>
      %20 = arith.addf %17, %19 : vector<64x128xf32>
      %21 = tpu.iota {dimensions = array<i32: 1>} : vector<1x128xi32>
      %cst_19 = arith.constant 0.000000e+00 : f32
      %22 = vector.broadcast %cst_19 : f32 to vector<1x128xf32>
      %c0_i32_20 = arith.constant 0 : i32
      %23 = vector.broadcast %c0_i32_20 : i32 to vector<1x128xi32>
      %24 = arith.cmpi eq, %21, %23 : vector<1x128xi32>
      %25 = arith.extui %24 : vector<1x128xi1> to vector<1x128xi32>
      %26 = arith.sitofp %25 : vector<1x128xi32> to vector<1x128xf32>
      %cst_21 = arith.constant -1.000000e+00 : f32
      %27 = vector.broadcast %cst_21 : f32 to vector<1x128xf32>
      %28 = arith.mulf %27, %26 : vector<1x128xf32>
      %29 = arith.addf %22, %28 : vector<1x128xf32>
      %c1_i32 = arith.constant 1 : i32
      %30 = vector.broadcast %c1_i32 : i32 to vector<1x128xi32>
      %31 = arith.cmpi eq, %21, %30 : vector<1x128xi32>
      %32 = arith.extui %31 : vector<1x128xi1> to vector<1x128xi32>
      %33 = arith.sitofp %32 : vector<1x128xi32> to vector<1x128xf32>
      %cst_22 = arith.constant 1.000000e+00 : f32
      %34 = vector.broadcast %cst_22 : f32 to vector<1x128xf32>
      %35 = arith.mulf %34, %33 : vector<1x128xf32>
      %36 = arith.addf %29, %35 : vector<1x128xf32>
      %cst_23 = arith.constant 0.000000e+00 : f32
      %37 = vector.broadcast %cst_23 : f32 to vector<1x128xf32>
      %38 = arith.cmpf one, %36, %37 : vector<1x128xf32>
      %cst_24 = arith.constant 0.000000e+00 : f32
      %39 = vector.broadcast %cst_24 : f32 to vector<1x128xf32>
      %c2_i32 = arith.constant 2 : i32
      %40 = vector.broadcast %c2_i32 : i32 to vector<1x128xi32>
      %41 = arith.cmpi eq, %21, %40 : vector<1x128xi32>
      %42 = arith.extui %41 : vector<1x128xi1> to vector<1x128xi32>
      %43 = arith.sitofp %42 : vector<1x128xi32> to vector<1x128xf32>
      %cst_25 = arith.constant -1.000000e+00 : f32
      %44 = vector.broadcast %cst_25 : f32 to vector<1x128xf32>
      %45 = arith.mulf %44, %43 : vector<1x128xf32>
      %46 = arith.addf %39, %45 : vector<1x128xf32>
      %c3_i32 = arith.constant 3 : i32
      %47 = vector.broadcast %c3_i32 : i32 to vector<1x128xi32>
      %48 = arith.cmpi eq, %21, %47 : vector<1x128xi32>
      %49 = arith.extui %48 : vector<1x128xi1> to vector<1x128xi32>
      %50 = arith.sitofp %49 : vector<1x128xi32> to vector<1x128xf32>
      %cst_26 = arith.constant 1.000000e+00 : f32
      %51 = vector.broadcast %cst_26 : f32 to vector<1x128xf32>
      %52 = arith.mulf %51, %50 : vector<1x128xf32>
      %53 = arith.addf %46, %52 : vector<1x128xf32>
      %c4_i32 = arith.constant 4 : i32
      %54 = vector.broadcast %c4_i32 : i32 to vector<1x128xi32>
      %55 = arith.cmpi eq, %21, %54 : vector<1x128xi32>
      %56 = arith.extui %55 : vector<1x128xi1> to vector<1x128xi32>
      %57 = arith.sitofp %56 : vector<1x128xi32> to vector<1x128xf32>
      %cst_27 = arith.constant 1.000000e+00 : f32
      %58 = vector.broadcast %cst_27 : f32 to vector<1x128xf32>
      %59 = arith.mulf %58, %57 : vector<1x128xf32>
      %60 = arith.addf %53, %59 : vector<1x128xf32>
      %cst_28 = arith.constant 0.000000e+00 : f32
      %61 = vector.broadcast %cst_28 : f32 to vector<1x128xf32>
      %62 = arith.cmpf one, %60, %61 : vector<1x128xf32>
      %cst_29 = arith.constant 0.000000e+00 : f32
      %63 = vector.broadcast %cst_29 : f32 to vector<1x128xf32>
      %c5_i32 = arith.constant 5 : i32
      %64 = vector.broadcast %c5_i32 : i32 to vector<1x128xi32>
      %65 = arith.cmpi eq, %21, %64 : vector<1x128xi32>
      %66 = arith.extui %65 : vector<1x128xi1> to vector<1x128xi32>
      %67 = arith.sitofp %66 : vector<1x128xi32> to vector<1x128xf32>
      %cst_30 = arith.constant -1.000000e+00 : f32
      %68 = vector.broadcast %cst_30 : f32 to vector<1x128xf32>
      %69 = arith.mulf %68, %67 : vector<1x128xf32>
      %70 = arith.addf %63, %69 : vector<1x128xf32>
      %c6_i32 = arith.constant 6 : i32
      %71 = vector.broadcast %c6_i32 : i32 to vector<1x128xi32>
      %72 = arith.cmpi eq, %21, %71 : vector<1x128xi32>
      %73 = arith.extui %72 : vector<1x128xi1> to vector<1x128xi32>
      %74 = arith.sitofp %73 : vector<1x128xi32> to vector<1x128xf32>
      %cst_31 = arith.constant 1.000000e+00 : f32
      %75 = vector.broadcast %cst_31 : f32 to vector<1x128xf32>
      %76 = arith.mulf %75, %74 : vector<1x128xf32>
      %77 = arith.addf %70, %76 : vector<1x128xf32>
      %c7_i32 = arith.constant 7 : i32
      %78 = vector.broadcast %c7_i32 : i32 to vector<1x128xi32>
      %79 = arith.cmpi eq, %21, %78 : vector<1x128xi32>
      %80 = arith.extui %79 : vector<1x128xi1> to vector<1x128xi32>
      %81 = arith.sitofp %80 : vector<1x128xi32> to vector<1x128xf32>
      %cst_32 = arith.constant 1.000000e+00 : f32
      %82 = vector.broadcast %cst_32 : f32 to vector<1x128xf32>
      %83 = arith.mulf %82, %81 : vector<1x128xf32>
      %84 = arith.addf %77, %83 : vector<1x128xf32>
      %cst_33 = arith.constant 0.000000e+00 : f32
      %85 = vector.broadcast %cst_33 : f32 to vector<1x128xf32>
      %86 = arith.cmpf one, %84, %85 : vector<1x128xf32>
      %cst_34 = arith.constant 0.000000e+00 : f32
      %87 = vector.broadcast %cst_34 : f32 to vector<64x128xf32>
      %88 = vector.broadcast %36 : vector<1x128xf32> to vector<64x128xf32>
      %89 = arith.mulf %20, %88 : vector<64x128xf32>
      %cst_35 = arith.constant -1.000000e+30 : f32
      %90 = vector.shape_cast %38 : vector<1x128xi1> to vector<1x128xi1>
      %91 = vector.broadcast %90 : vector<1x128xi1> to vector<64x128xi1>
      %92 = vector.broadcast %cst_35 : f32 to vector<64x128xf32>
      %93 = arith.select %91, %89, %92 : vector<64x128xi1>, vector<64x128xf32>
      %cst_36 = arith.constant dense<0xFF800000> : vector<64xf32>
      %94 = vector.multi_reduction <maximumf>, %93, %cst_36 [1] : vector<64x128xf32> to vector<64xf32>
      %95 = vector.shape_cast %94 : vector<64xf32> to vector<64x1xf32>
      %96 = vector.broadcast %95 : vector<64x1xf32> to vector<64x128xf32>
      %97 = arith.subf %93, %96 : vector<64x128xf32>
      %98 = math.exp %97 : vector<64x128xf32>
      %cst_37 = arith.constant 0.000000e+00 : f32
      %99 = vector.shape_cast %38 : vector<1x128xi1> to vector<1x128xi1>
      %100 = vector.broadcast %99 : vector<1x128xi1> to vector<64x128xi1>
      %101 = vector.broadcast %cst_37 : f32 to vector<64x128xf32>
      %102 = arith.select %100, %98, %101 : vector<64x128xi1>, vector<64x128xf32>
      %cst_38 = arith.constant dense<0.000000e+00> : vector<64xf32>
      %103 = vector.multi_reduction <add>, %102, %cst_38 [1] : vector<64x128xf32> to vector<64xf32>
      %104 = vector.shape_cast %103 : vector<64xf32> to vector<64x1xf32>
      %cst_39 = arith.constant 1.000000e-30 : f32
      %105 = vector.broadcast %cst_39 : f32 to vector<64x1xf32>
      %106 = arith.maximumf %104, %105 : vector<64x1xf32>
      %107 = tpu.reciprocal %106 {approx = true} : vector<64x1xf32> -> vector<64x1xf32>
      %108 = vector.broadcast %107 : vector<64x1xf32> to vector<64x128xf32>
      %109 = arith.mulf %102, %108 : vector<64x128xf32>
      %110 = vector.broadcast %36 : vector<1x128xf32> to vector<64x128xf32>
      %111 = arith.mulf %110, %109 : vector<64x128xf32>
      %cst_40 = arith.constant 5.000000e-01 : f32
      %112 = vector.broadcast %cst_40 : f32 to vector<64x128xf32>
      %113 = arith.mulf %112, %111 : vector<64x128xf32>
      %114 = arith.addf %87, %113 : vector<64x128xf32>
      %115 = vector.broadcast %60 : vector<1x128xf32> to vector<64x128xf32>
      %116 = arith.mulf %20, %115 : vector<64x128xf32>
      %cst_41 = arith.constant -1.000000e+30 : f32
      %117 = vector.shape_cast %62 : vector<1x128xi1> to vector<1x128xi1>
      %118 = vector.broadcast %117 : vector<1x128xi1> to vector<64x128xi1>
      %119 = vector.broadcast %cst_41 : f32 to vector<64x128xf32>
      %120 = arith.select %118, %116, %119 : vector<64x128xi1>, vector<64x128xf32>
      %cst_42 = arith.constant dense<0xFF800000> : vector<64xf32>
      %121 = vector.multi_reduction <maximumf>, %120, %cst_42 [1] : vector<64x128xf32> to vector<64xf32>
      %122 = vector.shape_cast %121 : vector<64xf32> to vector<64x1xf32>
      %123 = vector.broadcast %122 : vector<64x1xf32> to vector<64x128xf32>
      %124 = arith.subf %120, %123 : vector<64x128xf32>
      %125 = math.exp %124 : vector<64x128xf32>
      %cst_43 = arith.constant 0.000000e+00 : f32
      %126 = vector.shape_cast %62 : vector<1x128xi1> to vector<1x128xi1>
      %127 = vector.broadcast %126 : vector<1x128xi1> to vector<64x128xi1>
      %128 = vector.broadcast %cst_43 : f32 to vector<64x128xf32>
      %129 = arith.select %127, %125, %128 : vector<64x128xi1>, vector<64x128xf32>
      %cst_44 = arith.constant dense<0.000000e+00> : vector<64xf32>
      %130 = vector.multi_reduction <add>, %129, %cst_44 [1] : vector<64x128xf32> to vector<64xf32>
      %131 = vector.shape_cast %130 : vector<64xf32> to vector<64x1xf32>
      %cst_45 = arith.constant 1.000000e-30 : f32
      %132 = vector.broadcast %cst_45 : f32 to vector<64x1xf32>
      %133 = arith.maximumf %131, %132 : vector<64x1xf32>
      %134 = tpu.reciprocal %133 {approx = true} : vector<64x1xf32> -> vector<64x1xf32>
      %135 = vector.broadcast %134 : vector<64x1xf32> to vector<64x128xf32>
      %136 = arith.mulf %129, %135 : vector<64x128xf32>
      %137 = vector.broadcast %60 : vector<1x128xf32> to vector<64x128xf32>
      %138 = arith.mulf %137, %136 : vector<64x128xf32>
      %cst_46 = arith.constant 5.000000e-01 : f32
      %139 = vector.broadcast %cst_46 : f32 to vector<64x128xf32>
      %140 = arith.mulf %139, %138 : vector<64x128xf32>
      %141 = arith.addf %114, %140 : vector<64x128xf32>
      %142 = vector.broadcast %84 : vector<1x128xf32> to vector<64x128xf32>
      %143 = arith.mulf %20, %142 : vector<64x128xf32>
      %cst_47 = arith.constant -1.000000e+30 : f32
      %144 = vector.shape_cast %86 : vector<1x128xi1> to vector<1x128xi1>
      %145 = vector.broadcast %144 : vector<1x128xi1> to vector<64x128xi1>
      %146 = vector.broadcast %cst_47 : f32 to vector<64x128xf32>
      %147 = arith.select %145, %143, %146 : vector<64x128xi1>, vector<64x128xf32>
      %cst_48 = arith.constant dense<0xFF800000> : vector<64xf32>
      %148 = vector.multi_reduction <maximumf>, %147, %cst_48 [1] : vector<64x128xf32> to vector<64xf32>
      %149 = vector.shape_cast %148 : vector<64xf32> to vector<64x1xf32>
      %150 = vector.broadcast %149 : vector<64x1xf32> to vector<64x128xf32>
      %151 = arith.subf %147, %150 : vector<64x128xf32>
      %152 = math.exp %151 : vector<64x128xf32>
      %cst_49 = arith.constant 0.000000e+00 : f32
      %153 = vector.shape_cast %86 : vector<1x128xi1> to vector<1x128xi1>
      %154 = vector.broadcast %153 : vector<1x128xi1> to vector<64x128xi1>
      %155 = vector.broadcast %cst_49 : f32 to vector<64x128xf32>
      %156 = arith.select %154, %152, %155 : vector<64x128xi1>, vector<64x128xf32>
      %cst_50 = arith.constant dense<0.000000e+00> : vector<64xf32>
      %157 = vector.multi_reduction <add>, %156, %cst_50 [1] : vector<64x128xf32> to vector<64xf32>
      %158 = vector.shape_cast %157 : vector<64xf32> to vector<64x1xf32>
      %cst_51 = arith.constant 1.000000e-30 : f32
      %159 = vector.broadcast %cst_51 : f32 to vector<64x1xf32>
      %160 = arith.maximumf %158, %159 : vector<64x1xf32>
      %161 = tpu.reciprocal %160 {approx = true} : vector<64x1xf32> -> vector<64x1xf32>
      %162 = vector.broadcast %161 : vector<64x1xf32> to vector<64x128xf32>
      %163 = arith.mulf %156, %162 : vector<64x128xf32>
      %164 = vector.broadcast %84 : vector<1x128xf32> to vector<64x128xf32>
      %165 = arith.mulf %164, %163 : vector<64x128xf32>
      %cst_52 = arith.constant 5.000000e-01 : f32
      %166 = vector.broadcast %cst_52 : f32 to vector<64x128xf32>
      %167 = arith.mulf %166, %165 : vector<64x128xf32>
      %168 = arith.addf %141, %167 : vector<64x128xf32>
      %169 = arith.addf %20, %168 : vector<64x128xf32>
      %cst_53 = arith.constant 0.000000e+00 : f32
      %170 = vector.broadcast %cst_53 : f32 to vector<64x128xf32>
      %171 = vector.broadcast %36 : vector<1x128xf32> to vector<64x128xf32>
      %172 = arith.mulf %169, %171 : vector<64x128xf32>
      %cst_54 = arith.constant -1.000000e+30 : f32
      %173 = vector.shape_cast %38 : vector<1x128xi1> to vector<1x128xi1>
      %174 = vector.broadcast %173 : vector<1x128xi1> to vector<64x128xi1>
      %175 = vector.broadcast %cst_54 : f32 to vector<64x128xf32>
      %176 = arith.select %174, %172, %175 : vector<64x128xi1>, vector<64x128xf32>
      %cst_55 = arith.constant dense<0xFF800000> : vector<64xf32>
      %177 = vector.multi_reduction <maximumf>, %176, %cst_55 [1] : vector<64x128xf32> to vector<64xf32>
      %178 = vector.shape_cast %177 : vector<64xf32> to vector<64x1xf32>
      %179 = vector.broadcast %178 : vector<64x1xf32> to vector<64x128xf32>
      %180 = arith.subf %176, %179 : vector<64x128xf32>
      %181 = math.exp %180 : vector<64x128xf32>
      %cst_56 = arith.constant 0.000000e+00 : f32
      %182 = vector.shape_cast %38 : vector<1x128xi1> to vector<1x128xi1>
      %183 = vector.broadcast %182 : vector<1x128xi1> to vector<64x128xi1>
      %184 = vector.broadcast %cst_56 : f32 to vector<64x128xf32>
      %185 = arith.select %183, %181, %184 : vector<64x128xi1>, vector<64x128xf32>
      %cst_57 = arith.constant dense<0.000000e+00> : vector<64xf32>
      %186 = vector.multi_reduction <add>, %185, %cst_57 [1] : vector<64x128xf32> to vector<64xf32>
      %187 = vector.shape_cast %186 : vector<64xf32> to vector<64x1xf32>
      %cst_58 = arith.constant 1.000000e-30 : f32
      %188 = vector.broadcast %cst_58 : f32 to vector<64x1xf32>
      %189 = arith.maximumf %187, %188 : vector<64x1xf32>
      %190 = tpu.reciprocal %189 {approx = true} : vector<64x1xf32> -> vector<64x1xf32>
      %191 = vector.broadcast %190 : vector<64x1xf32> to vector<64x128xf32>
      %192 = arith.mulf %185, %191 : vector<64x128xf32>
      %193 = vector.broadcast %36 : vector<1x128xf32> to vector<64x128xf32>
      %194 = arith.mulf %193, %192 : vector<64x128xf32>
      %cst_59 = arith.constant 5.000000e-01 : f32
      %195 = vector.broadcast %cst_59 : f32 to vector<64x128xf32>
      %196 = arith.mulf %195, %194 : vector<64x128xf32>
      %197 = arith.addf %170, %196 : vector<64x128xf32>
      %198 = vector.broadcast %60 : vector<1x128xf32> to vector<64x128xf32>
      %199 = arith.mulf %169, %198 : vector<64x128xf32>
      %cst_60 = arith.constant -1.000000e+30 : f32
      %200 = vector.shape_cast %62 : vector<1x128xi1> to vector<1x128xi1>
      %201 = vector.broadcast %200 : vector<1x128xi1> to vector<64x128xi1>
      %202 = vector.broadcast %cst_60 : f32 to vector<64x128xf32>
      %203 = arith.select %201, %199, %202 : vector<64x128xi1>, vector<64x128xf32>
      %cst_61 = arith.constant dense<0xFF800000> : vector<64xf32>
      %204 = vector.multi_reduction <maximumf>, %203, %cst_61 [1] : vector<64x128xf32> to vector<64xf32>
      %205 = vector.shape_cast %204 : vector<64xf32> to vector<64x1xf32>
      %206 = vector.broadcast %205 : vector<64x1xf32> to vector<64x128xf32>
      %207 = arith.subf %203, %206 : vector<64x128xf32>
      %208 = math.exp %207 : vector<64x128xf32>
      %cst_62 = arith.constant 0.000000e+00 : f32
      %209 = vector.shape_cast %62 : vector<1x128xi1> to vector<1x128xi1>
      %210 = vector.broadcast %209 : vector<1x128xi1> to vector<64x128xi1>
      %211 = vector.broadcast %cst_62 : f32 to vector<64x128xf32>
      %212 = arith.select %210, %208, %211 : vector<64x128xi1>, vector<64x128xf32>
      %cst_63 = arith.constant dense<0.000000e+00> : vector<64xf32>
      %213 = vector.multi_reduction <add>, %212, %cst_63 [1] : vector<64x128xf32> to vector<64xf32>
      %214 = vector.shape_cast %213 : vector<64xf32> to vector<64x1xf32>
      %cst_64 = arith.constant 1.000000e-30 : f32
      %215 = vector.broadcast %cst_64 : f32 to vector<64x1xf32>
      %216 = arith.maximumf %214, %215 : vector<64x1xf32>
      %217 = tpu.reciprocal %216 {approx = true} : vector<64x1xf32> -> vector<64x1xf32>
      %218 = vector.broadcast %217 : vector<64x1xf32> to vector<64x128xf32>
      %219 = arith.mulf %212, %218 : vector<64x128xf32>
      %220 = vector.broadcast %60 : vector<1x128xf32> to vector<64x128xf32>
      %221 = arith.mulf %220, %219 : vector<64x128xf32>
      %cst_65 = arith.constant 5.000000e-01 : f32
      %222 = vector.broadcast %cst_65 : f32 to vector<64x128xf32>
      %223 = arith.mulf %222, %221 : vector<64x128xf32>
      %224 = arith.addf %197, %223 : vector<64x128xf32>
      %225 = vector.broadcast %84 : vector<1x128xf32> to vector<64x128xf32>
      %226 = arith.mulf %169, %225 : vector<64x128xf32>
      %cst_66 = arith.constant -1.000000e+30 : f32
      %227 = vector.shape_cast %86 : vector<1x128xi1> to vector<1x128xi1>
      %228 = vector.broadcast %227 : vector<1x128xi1> to vector<64x128xi1>
      %229 = vector.broadcast %cst_66 : f32 to vector<64x128xf32>
      %230 = arith.select %228, %226, %229 : vector<64x128xi1>, vector<64x128xf32>
      %cst_67 = arith.constant dense<0xFF800000> : vector<64xf32>
      %231 = vector.multi_reduction <maximumf>, %230, %cst_67 [1] : vector<64x128xf32> to vector<64xf32>
      %232 = vector.shape_cast %231 : vector<64xf32> to vector<64x1xf32>
      %233 = vector.broadcast %232 : vector<64x1xf32> to vector<64x128xf32>
      %234 = arith.subf %230, %233 : vector<64x128xf32>
      %235 = math.exp %234 : vector<64x128xf32>
      %cst_68 = arith.constant 0.000000e+00 : f32
      %236 = vector.shape_cast %86 : vector<1x128xi1> to vector<1x128xi1>
      %237 = vector.broadcast %236 : vector<1x128xi1> to vector<64x128xi1>
      %238 = vector.broadcast %cst_68 : f32 to vector<64x128xf32>
      %239 = arith.select %237, %235, %238 : vector<64x128xi1>, vector<64x128xf32>
      %cst_69 = arith.constant dense<0.000000e+00> : vector<64xf32>
      %240 = vector.multi_reduction <add>, %239, %cst_69 [1] : vector<64x128xf32> to vector<64xf32>
      %241 = vector.shape_cast %240 : vector<64xf32> to vector<64x1xf32>
      %cst_70 = arith.constant 1.000000e-30 : f32
      %242 = vector.broadcast %cst_70 : f32 to vector<64x1xf32>
      %243 = arith.maximumf %241, %242 : vector<64x1xf32>
      %244 = tpu.reciprocal %243 {approx = true} : vector<64x1xf32> -> vector<64x1xf32>
      %245 = vector.broadcast %244 : vector<64x1xf32> to vector<64x128xf32>
      %246 = arith.mulf %239, %245 : vector<64x128xf32>
      %247 = vector.broadcast %84 : vector<1x128xf32> to vector<64x128xf32>
      %248 = arith.mulf %247, %246 : vector<64x128xf32>
      %cst_71 = arith.constant 5.000000e-01 : f32
      %249 = vector.broadcast %cst_71 : f32 to vector<64x128xf32>
      %250 = arith.mulf %249, %248 : vector<64x128xf32>
      %251 = arith.addf %224, %250 : vector<64x128xf32>
      %252 = arith.addf %169, %251 : vector<64x128xf32>
      %c0_72 = arith.constant 0 : index
      %c0_73 = arith.constant 0 : index
      %253 = vector.load %arg7[%c0_72, %c0_73] : memref<64x128xf32, #tpu.memory_space<vmem>>, vector<64x128xf32>
      tpu.vector_store %arg7[%c0_72, %c0_73], %252 {strides = array<i32>} : memref<64x128xf32, #tpu.memory_space<vmem>>, vector<64x128xf32>,
    } else {
    }
    return
  }
  func.func @transform_0(%arg0: i32, %arg1: i32) -> (i32, i32) {
    %c0_i32 = arith.constant 0 : i32
    return %arg0, %arg1 : i32, i32
  }
  func.func @transform_1(%arg0: i32, %arg1: i32) -> (i32, i32) {
    %c0_i32 = arith.constant 0 : i32
    %c0_i32_0 = arith.constant 0 : i32
    return %arg1, %c0_i32 : i32, i32
  }
  func.func @transform_2(%arg0: i32, %arg1: i32) -> (i32, i32) {
    %c0_i32 = arith.constant 0 : i32
    %c0_i32_0 = arith.constant 0 : i32
    return %arg0, %c0_i32 : i32, i32
  }
  func.func @transform_3(%arg0: i32, %arg1: i32) -> (i32, i32) {
    %c0_i32 = arith.constant 0 : i32
    %c0_i32_0 = arith.constant 0 : i32
    %c0_i32_1 = arith.constant 0 : i32
    return %c0_i32, %c0_i32_0 : i32, i32
  }
  func.func @transform_4(%arg0: i32, %arg1: i32) -> (i32, i32) {
    %c0_i32 = arith.constant 0 : i32
    %c0_i32_0 = arith.constant 0 : i32
    %c0_i32_1 = arith.constant 0 : i32
    return %c0_i32, %c0_i32_0 : i32, i32
  }
  func.func @transform_5(%arg0: i32, %arg1: i32) -> (i32, i32) {
    %c0_i32 = arith.constant 0 : i32
    %c0_i32_0 = arith.constant 0 : i32
    return %arg0, %c0_i32 : i32, i32
  }
}

</mosaic_0001>

<bundles_post_ra>
// kernel: forward.3
= control target key start
LH: loop header
LB: loop body
LE: loop exit
PB: predicated region body
PF: predicated region fallthrough
CT: control target
= control target key end

     0   :  { %s1155_s18 = smov 0   ;;  %s1157_s19 = smov 0   ;;  %s1283_s0 = inlined_call_operand.vmem [shape: bf16[128,128], index: 0, kind: input, shape index: {}]   ;;  %s1284_s1 = inlined_call_operand.vmem [shape: bf16[128,128], index: 1, kind: input, shape index: {}, may-alias: {1,2}]   ;;  %s1285_s2 = inlined_call_operand.vmem [shape: bf16[128,128], index: 2, kind: input, shape index: {}, may-alias: {1,2}]   ;;  %s1286_s3 = inlined_call_operand.vmem [shape: bf16[256,128], index: 3, kind: input, shape index: {}]   ;;  %s1287_s4 = inlined_call_operand.vmem [shape: f32[1,128], index: 4, kind: input, shape index: {}]   ;;  %s1288_s5 = inlined_call_operand.vmem [shape: bf16[128,128], index: 5, kind: output, shape index: {}]  }
   0x1   :  { %s1159_s20 = smov 0  }
   0x2 LB: > { %s27_s21 = sadd.s32 1, %s1119_s19  ;;  %p888_p0 = scmp.ge.s32.totalorder %s1123_s20, 1  ;;  %s1123_s20 = sphi %s1159_s20, %s15_s20   ;;  %s1119_s19 = sphi %s1157_s19, %s1290_s19   ;;  %s1115_s18 = sphi %s1155_s18, %s1289_s18  }
   0x3   : > { %p29_p1 = scmp.ge.s32.totalorder %s27_s21, 2  ;;  %p227_p2 = scmp.lt.s32.totalorder %s1123_s20, 3 }
   0x5   : > { %s1292_s21 = smov (%p29_p1, %s27_s21), 0  ;;  %p228_p3 = pnand %p888_p0, %p227_p2 }
   0x6   : > { %v1069_v0 = vld [vmem:[%s1284_s1] sm:$0xff] (!%p228_p3)   ;;  %s889_s24 = sshll.u32 (!%p228_p3), %s1115_s18, 3  ;;  %v1070_v1 = vld [vmem:[%s1284_s1 + $0x8] sm:$0xff] (!%p228_p3)   ;;  %v1071_v2 = vld [vmem:[%s1284_s1 + $0x10] sm:$0xff] (!%p228_p3)  }
   0x7   : > { %231 = sbr.rel (%p228_p3) target bundleno = 504 (0x1f8), region = 40  ;;  %p269_p4 = scmp.lt.s32.totalorder (!%p228_p3), %s889_s24, 15  ;;  %1021 = vmatprep.subr.bf16.mxu0 (!%p228_p3), %v1069_v0  ;;  %v1072_v3 = vld [vmem:[%s1284_s1 + $0x18] sm:$0xff] (!%p228_p3)   ;;  %v1073_v5 = vld [vmem:[%s1284_s1 + $0x20] sm:$0xff] (!%p228_p3)   ;;  %v1074_v8 = vld [vmem:[%s1284_s1 + $0x28] sm:$0xff] (!%p228_p3)  }
   0x8   : > { %1022 = vmatpush3.bf16.msra.mxu0 (!%p228_p3), %v1069_v0  ;;  %v1081_v6 = vld [vmem:[%s1286_s3 + $0x40] sm:$0xff] (!%p228_p3)   ;;  %v1083_v9 = vld [vmem:[%s1286_s3 + $0x48] sm:$0xff] (!%p228_p3)   ;;  %v1085_v11 = vld [vmem:[%s1286_s3 + $0x50] sm:$0xff] (!%p228_p3)  }
   0x9   : > { %1023 = vmatprep.subr.bf16.mxu0 (!%p228_p3), %v1070_v1  ;;  %v1082_v7 = vld [vmem:[%s1286_s3] sm:$0xff] (!%p228_p3)   ;;  %981 = vmatprep.subr.bf16.mxu1 (!%p228_p3), %v1081_v6  ;;  %v1084_v10 = vld [vmem:[%s1286_s3 + $0x8] sm:$0xff] (!%p228_p3)   ;;  %v1075_v12 = vld [vmem:[%s1284_s1 + $0x30] sm:$0xff] (!%p228_p3)  }
   0xa   : > { %982 = vmatpush3.bf16.msra.mxu1 (!%p228_p3), %v1082_v7  ;;  %v1086_v13 = vld [vmem:[%s1286_s3 + $0x10] sm:$0xff] (!%p228_p3)   ;;  %v1087_v14 = vld [vmem:[%s1286_s3 + $0x58] sm:$0xff] (!%p228_p3)   ;;  %v1089_v17 = vld [vmem:[%s1286_s3 + $0x60] sm:$0xff] (!%p228_p3)  }
   0xb   : > { %983 = vmatprep.subr.bf16.mxu1 (!%p228_p3), %v1083_v9  ;;  %v1076_v15 = vld [vmem:[%s1284_s1 + $0x38] sm:$0xff] (!%p228_p3)   ;;  %v1090_v18 = vld [vmem:[%s1286_s3 + $0x20] sm:$0xff] (!%p228_p3)   ;;  %v1091_v19 = vld [vmem:[%s1286_s3 + $0x68] sm:$0xff] (!%p228_p3)  }
   0xc   : > { %1024 = vmatpush3.bf16.msra.mxu0 (!%p228_p3), %v1070_v1  ;;  %v1088_v16 = vld [vmem:[%s1286_s3 + $0x18] sm:$0xff] (!%p228_p3)   ;;  %v1092_v22 = vld [vmem:[%s1286_s3 + $0x28] sm:$0xff] (!%p228_p3)   ;;  %v1093_v23 = vld [vmem:[%s1286_s3 + $0x70] sm:$0xff] (!%p228_p3)  }
   0xd   : > { %1025 = vmatprep.subr.bf16.mxu0 (!%p228_p3), %v1071_v2  ;;  %v1094_v24 = vld [vmem:[%s1286_s3 + $0x30] sm:$0xff] (!%p228_p3)   ;;  %v1095_v26 = vld [vmem:[%s1286_s3 + $0x78] sm:$0xff] (!%p228_p3)   ;;  %v911_v45 = vld [vmem:[%s1287_s4] ss:$0 sm:$0xff] (!%p228_p3) }
   0xe   : > { %s1294_s24 = smov (!%p269_p4, %s889_s24), 15  ;;  %984 = vmatpush3.bf16.msra.mxu1 %v1084_v10  ;;  %v1096_v27 = vld [vmem:[%s1286_s3 + $0x38] sm:$0xff]  }
   0xf   : > { %s1182_s29 = sshll.u32 %s1294_s24, 2  ;;  %985 = vmatprep.subr.bf16.mxu1 %v1085_v11 }
  0x10   : > { %s1188_s7 = scalar_lea.vmem %s1283_s0, %s1182_s29  ;;  %1026 = vmatpush3.bf16.msra.mxu0 %v1071_v2  ;;  %s287_s12 = scalar_lea.vmem %s1285_s2, %s1182_s29 }
  0x11   : > { %v1077_v4 = vld [vmem:[%s1188_s7] sm:$0xff]   ;;  %1027 = vmatprep.subr.bf16.mxu0 %v1072_v3  ;;  %v1078_v20 = vld [vmem:[%s1188_s7 + $0x8] sm:$0xff]   ;;  %v1079_v21 = vld [vmem:[%s1188_s7 + $0x10] sm:$0xff]   ;;  %s1268_s16 = scalar_lea.vmem %s1288_s5, %s1182_s29 }
  0x12   : > { %1037 = vmatprep.mubr.bf16.mxu0 %v1077_v4  ;;  %986 = vmatpush3.bf16.msra.mxu1 %v1086_v13  ;;  %v1080_v25 = vld [vmem:[%s1188_s7 + $0x18] sm:$0xff]   ;;  %v1097_v28 = vld [vmem:[%s287_s12] sm:$0xff]   ;;  %v1098_v34 = vld [vmem:[%s287_s12 + $0x8] sm:$0xff]  }
  0x13   : > { %987 = vmatprep.subr.bf16.mxu1 %v1087_v14  ;;  %707 = vmatprep.mubr.bf16.mxu1 %v1097_v28  ;;  %v1099_v41 = vld [vmem:[%s287_s12 + $0x10] sm:$0xff]   ;;  %v1100_v43 = vld [vmem:[%s287_s12 + $0x18] sm:$0xff]  }
  0x14   : > { %1028 = vmatpush3.bf16.msra.mxu0 %v1072_v3 }
  0x15   : > { %1029 = vmatprep.subr.bf16.mxu0 %v1073_v5 }
  0x16   : > { %988 = vmatpush3.bf16.msra.mxu1 %v1088_v16 }
  0x17   : > { %989 = vmatprep.subr.bf16.mxu1 %v1089_v17 }
  0x18   : > { %1030 = vmatpush3.bf16.msra.mxu0 %v1073_v5 }
  0x19   : > { %1031 = vmatprep.subr.bf16.mxu0 %v1074_v8 }
  0x1a   : > { %990 = vmatpush3.bf16.msra.mxu1 %v1090_v18 }
  0x1b   : > { %991 = vmatprep.subr.bf16.mxu1 %v1091_v19 }
  0x1c   : > { %1032 = vmatpush3.bf16.msra.mxu0 %v1074_v8 }
  0x1d   : > { %1033 = vmatprep.subr.bf16.mxu0 %v1075_v12 }
  0x1e   : > { %992 = vmatpush3.bf16.msra.mxu1 %v1092_v22 }
  0x1f   : > { %993 = vmatprep.subr.bf16.mxu1 %v1093_v23 }
  0x20   : > { %1034 = vmatpush3.bf16.msra.mxu0 %v1075_v12 }
  0x21   : > { %1035 = vmatprep.subr.bf16.mxu0 %v1076_v15 }
  0x22   : > { %994 = vmatpush3.bf16.msra.mxu1 %v1094_v24 }
  0x23   : > { %995 = vmatprep.subr.bf16.mxu1 %v1095_v26 }
  0x24   : > { %1036 = vmatpush3.bf16.msra.mxu0 %v1076_v15 }
  0x26   : > { %996 = vmatpush3.bf16.msra.mxu1 %v1096_v27 }
  0x27   : > { %1038 = vmatmul.mubr.bf16.vlgmr.msra.gmra.mrb[0].mxu0 %v1078_v20 }
  0x28   : > { %1041 = vmatprep.mubr.bf16.mxu0 %v1079_v21 }
  0x2f   : > { %1042 = vmatmul.mubr.bf16.gmra.mrb[4].mxu0 %v1080_v25 }
  0xfa   : > { %v1039_v29 = vpop.f32.mrb[0].mxu0 }
  0xfb   : > { %v446_v30 = vpop.f32.mrb[1].mxu0 }
  0xfc   : > { %v1040_v31 = vpop.f32.mrb[2].mxu0 }
  0xfd   : > { %v505_v32 = vpack.c.bf16 %v1040_v31, %v1039_v29  ;;  %v449_v33 = vpop.f32.mrb[3].mxu0 }
  0xfe   : > { %v504_v35 = vpack.c.bf16 %v449_v33, %v446_v30 }
 0x100   : > { %708 = vmatmul.mubr.bf16.vlgmr.msra.gmra.mrb[0].mxu1 %v504_v35 }
 0x101   : > { %715 = vmatprep.mubr.bf16.mxu1 %v1098_v34 }
 0x102   : > { %v1043_v36 = vpop.f32.mrb[4].mxu0 }
 0x103   : > { %v462_v37 = vpop.f32.mrb[5].mxu0 }
 0x104   : > { %v1044_v38 = vpop.f32.mrb[6].mxu0 }
 0x105   : > { %v507_v39 = vpack.c.bf16 %v1044_v38, %v1043_v36  ;;  %v465_v40 = vpop.f32.mrb[7].mxu0 }
 0x106   : > { %v506_v42 = vpack.c.bf16 %v465_v40, %v462_v37 }
 0x108   : > { %716 = vmatmul.mubr.bf16.gmra.mrb[4].mxu1 %v505_v32 }
 0x109   : > { %723 = vmatprep.mubr.bf16.mxu1 %v1099_v41 }
 0x110   : > { %724 = vmatmul.mubr.bf16.gmra.mrb[8].mxu1 %v506_v42 }
 0x111   : > { %731 = vmatprep.mubr.bf16.mxu1 %v1100_v43 }
 0x118   : > { %732 = vmatmul.mubr.bf16.gmra.mrb[12].mxu1 %v507_v39 }
 0x1d3   : > { %v997_v44 = vpop.f32.mrb[0].mxu1 }
 0x1d4   : > { %v998_v46 = vpop.f32.mrb[1].mxu1 }
 0x1d5   : > { %v999_v47 = vadd.f32 %v998_v46, %v997_v44  ;;  %v1000_v48 = vpop.f32.mrb[2].mxu1 }
 0x1d6   : > { %v1001_v49 = vpop.f32.mrb[3].mxu1 }
 0x1d7   : > { %v710_v50 = vadd.f32 %v999_v47, %v911_v45  ;;  %v1002_v51 = vadd.f32 %v1001_v49, %v1000_v48 }
 0x1d9   : > { %v713_v52 = vadd.f32 %v1002_v51, %v911_v45  ;;  %v740_v53 = vmax.f32 %v710_v50, 0.0 }
 0x1db   : > { %v741_v54 = vmax.f32 %v713_v52, 0.0  ;;  %v1003_v55 = vpop.f32.mrb[4].mxu1 }
 0x1dc   : > { %v1004_v56 = vpop.f32.mrb[5].mxu1 }
 0x1dd   : > { %v949_v57 = vpack.c.bf16 %v741_v54, %v740_v53  ;;  %v1005_v58 = vadd.f32 %v1004_v56, %v1003_v55  ;;  %v1006_v59 = vpop.f32.mrb[6].mxu1 }
 0x1de   : > { %v1007_v60 = vpop.f32.mrb[7].mxu1 }
 0x1df   : > { %950 = vst [vmem:[%s1268_s16] sm:$0xff] %v949_v57   ;;  %v718_v61 = vadd.f32 %v1005_v58, %v911_v45  ;;  %v1008_v62 = vadd.f32 %v1007_v60, %v1006_v59 }
 0x1e1   : > { %v721_v63 = vadd.f32 %v1008_v62, %v911_v45  ;;  %v742_v0 = vmax.f32 %v718_v61, 0.0 }
 0x1e3   : > { %v743_v1 = vmax.f32 %v721_v63, 0.0  ;;  %v1009_v2 = vpop.f32.mrb[8].mxu1 }
 0x1e4   : > { %v1010_v3 = vpop.f32.mrb[9].mxu1 }
 0x1e5   : > { %v954_v4 = vpack.c.bf16 %v743_v1, %v742_v0  ;;  %v1011_v5 = vadd.f32 %v1010_v3, %v1009_v2  ;;  %v1012_v6 = vpop.f32.mrb[10].mxu1 }
 0x1e6   : > { %v1013_v7 = vpop.f32.mrb[11].mxu1 }
 0x1e7   : > { %966 = vst [vmem:[%s1268_s16 + $0x8] sm:$0xff] %v954_v4   ;;  %v726_v8 = vadd.f32 %v1011_v5, %v911_v45  ;;  %v1014_v9 = vadd.f32 %v1013_v7, %v1012_v6 }
 0x1e9   : > { %v729_v10 = vadd.f32 %v1014_v9, %v911_v45  ;;  %v744_v11 = vmax.f32 %v726_v8, 0.0 }
 0x1eb   : > { %v745_v12 = vmax.f32 %v729_v10, 0.0  ;;  %v1015_v13 = vpop.f32.mrb[12].mxu1 }
 0x1ec   : > { %v1016_v14 = vpop.f32.mrb[13].mxu1 }
 0x1ed   : > { %v959_v15 = vpack.c.bf16 %v745_v12, %v744_v11  ;;  %v1017_v16 = vadd.f32 %v1016_v14, %v1015_v13  ;;  %v1018_v17 = vpop.f32.mrb[14].mxu1 }
 0x1ee   : > { %v1019_v18 = vpop.f32.mrb[15].mxu1 }
 0x1ef   : > { %967 = vst [vmem:[%s1268_s16 + $0x10] sm:$0xff] %v959_v15   ;;  %v734_v19 = vadd.f32 %v1017_v16, %v911_v45  ;;  %v1020_v20 = vadd.f32 %v1019_v18, %v1018_v17 }
 0x1f1   : > { %v737_v21 = vadd.f32 %v1020_v20, %v911_v45  ;;  %v746_v22 = vmax.f32 %v734_v19, 0.0 }
 0x1f3   : > { %v747_v23 = vmax.f32 %v737_v21, 0.0 }
 0x1f5   : > { %v964_v24 = vpack.c.bf16 %v747_v23, %v746_v22 }
 0x1f7   : > { %968 = vst [vmem:[%s1268_s16 + $0x18] sm:$0xff] %v964_v24  }
 0x1f8 PF: > { %s15_s20 = sadd.s32 1, %s1123_s20   ;;  %s1289_s18 = smov %s1119_s19 }
 0x1f9   : > { %p12_p5 = scmp.ge.s32.totalorder %s15_s20, 4   ;;  %s1290_s19 = smov %s1292_s21 }
 0x1fb   :  { %14 = sbr.rel (!%p12_p5) target bundleno = 2 (0x2), region = 84 }

// kernel: forward.5
= control target key start
LH: loop header
LB: loop body
LE: loop exit
PB: predicated region body
PF: predicated region fallthrough
CT: control target
= control target key end

     0   :  { %s2108_s18 = smov 0   ;;  %s2110_s19 = smov 0   ;;  %s3030_s0 = inlined_call_operand.vmem [shape: bf16[128,128], index: 0, kind: input, shape index: {}]   ;;  %s3031_s1 = inlined_call_operand.vmem [shape: bf16[128,128], index: 1, kind: input, shape index: {}, may-alias: {1,2}]   ;;  %s3032_s2 = inlined_call_operand.vmem [shape: bf16[128,128], index: 2, kind: input, shape index: {}, may-alias: {1,2}]   ;;  %s3033_s3 = inlined_call_operand.vmem [shape: bf16[256,128], index: 3, kind: input, shape index: {}]   ;;  %s3034_s4 = inlined_call_operand.vmem [shape: f32[1,128], index: 4, kind: input, shape index: {}]   ;;  %s3035_s5 = inlined_call_operand.vmem [shape: f32[128,128], index: 5, kind: output, shape index: {}]  }
   0x1   :  { %s2112_s20 = smov 0  }
   0x2 LB: > { %s27_s21 = sadd.s32 1, %s2071_s19  ;;  %p1678_p0 = scmp.ge.s32.totalorder %s2075_s20, 1  ;;  %s2075_s20 = sphi %s2112_s20, %s15_s20   ;;  %s2071_s19 = sphi %s2110_s19, %s3037_s19   ;;  %s2067_s18 = sphi %s2108_s18, %s3036_s18  }
   0x3   : > { %p29_p1 = scmp.ge.s32.totalorder %s27_s21, 2  ;;  %p227_p2 = scmp.lt.s32.totalorder %s2075_s20, 3 }
   0x5   : > { %s3039_s21 = smov (%p29_p1, %s27_s21), 0  ;;  %p228_p3 = pnand %p1678_p0, %p227_p2 }
   0x6   : > { %v1829_v0 = vld [vmem:[%s3031_s1] sm:$0xff] (!%p228_p3)   ;;  %s1679_s24 = sshll.u32 (!%p228_p3), %s2067_s18, 3  ;;  %v1830_v1 = vld [vmem:[%s3031_s1 + $0x8] sm:$0xff] (!%p228_p3)   ;;  %v1831_v2 = vld [vmem:[%s3031_s1 + $0x10] sm:$0xff] (!%p228_p3)   ;;  %v740_v44 = vlaneseq (!%p228_p3)  ;;  %v2077_v46 = vmov (!%p228_p3), 0.0  }
   0x7   : > { %231 = sbr.rel (%p228_p3) target bundleno = 1190 (0x4a6), region = 40  ;;  %p269_p4 = scmp.lt.s32.totalorder (!%p228_p3), %s1679_s24, 15  ;;  %1780 = vmatprep.subr.bf16.mxu0 (!%p228_p3), %v1829_v0  ;;  %v1832_v3 = vld [vmem:[%s3031_s1 + $0x18] sm:$0xff] (!%p228_p3)   ;;  %v1833_v5 = vld [vmem:[%s3031_s1 + $0x20] sm:$0xff] (!%p228_p3)   ;;  %v1834_v8 = vld [vmem:[%s3031_s1 + $0x28] sm:$0xff] (!%p228_p3)  }
   0x8   : > { %1781 = vmatpush3.bf16.msra.mxu0 (!%p228_p3), %v1829_v0  ;;  %v1841_v6 = vld [vmem:[%s3033_s3 + $0x40] sm:$0xff] (!%p228_p3)   ;;  %v1843_v9 = vld [vmem:[%s3033_s3 + $0x48] sm:$0xff] (!%p228_p3)   ;;  %v1845_v11 = vld [vmem:[%s3033_s3 + $0x50] sm:$0xff] (!%p228_p3)   ;;  %v741_v45 = vand.u32 (!%p228_p3), 127, %v740_v44 }
   0x9   : > { %1782 = vmatprep.subr.bf16.mxu0 (!%p228_p3), %v1830_v1  ;;  %v1842_v7 = vld [vmem:[%s3033_s3] sm:$0xff] (!%p228_p3)   ;;  %1740 = vmatprep.subr.bf16.mxu1 (!%p228_p3), %v1841_v6  ;;  %v1844_v10 = vld [vmem:[%s3033_s3 + $0x8] sm:$0xff] (!%p228_p3)   ;;  %v1835_v12 = vld [vmem:[%s3031_s1 + $0x30] sm:$0xff] (!%p228_p3)  }
   0xa   : > { %1741 = vmatpush3.bf16.msra.mxu1 (!%p228_p3), %v1842_v7  ;;  %v1846_v13 = vld [vmem:[%s3033_s3 + $0x10] sm:$0xff] (!%p228_p3)   ;;  %v1847_v14 = vld [vmem:[%s3033_s3 + $0x58] sm:$0xff] (!%p228_p3)   ;;  %v1849_v17 = vld [vmem:[%s3033_s3 + $0x60] sm:$0xff] (!%p228_p3)   ;;  %vm752_vm0 = vcmp.eq.s32.totalorder (!%p228_p3), %v741_v45, 2  ;;  %vm742_vm1 = vcmp.eq.s32.totalorder (!%p228_p3), %v741_v45, 0  ;;  %vm757_vm2 = vcmp.eq.s32.totalorder (!%p228_p3), %v741_v45, 3 }
   0xb   : > { %1742 = vmatprep.subr.bf16.mxu1 (!%p228_p3), %v1843_v9  ;;  %v1836_v15 = vld [vmem:[%s3031_s1 + $0x38] sm:$0xff] (!%p228_p3)   ;;  %v1850_v18 = vld [vmem:[%s3033_s3 + $0x20] sm:$0xff] (!%p228_p3)   ;;  %v1851_v19 = vld [vmem:[%s3033_s3 + $0x68] sm:$0xff] (!%p228_p3)   ;;  %v1720_v47 = vsel (!%p228_p3), %vm752_vm0, 1.0, %v2077_v46  ;;  %v1718_v48 = vsel (!%p228_p3), %vm742_vm1, 1.0, %v2077_v46  ;;  %vm766_vm3 = vcmp.eq.s32.totalorder (!%p228_p3), %v741_v45, 5 }
   0xc   : > { %1783 = vmatpush3.bf16.msra.mxu0 (!%p228_p3), %v1830_v1  ;;  %v1848_v16 = vld [vmem:[%s3033_s3 + $0x18] sm:$0xff] (!%p228_p3)   ;;  %v1852_v22 = vld [vmem:[%s3033_s3 + $0x28] sm:$0xff] (!%p228_p3)   ;;  %v1853_v23 = vld [vmem:[%s3033_s3 + $0x70] sm:$0xff] (!%p228_p3)   ;;  %vm747_vm4 = vcmp.eq.s32.totalorder (!%p228_p3), %v741_v45, 1  ;;  %v755_v49 = vmul.f32 (!%p228_p3), -1.0, %v1720_v47  ;;  %v745_v50 = vmul.f32 (!%p228_p3), -1.0, %v1718_v48 }
   0xd   : > { %1784 = vmatprep.subr.bf16.mxu0 (!%p228_p3), %v1831_v2  ;;  %v1854_v24 = vld [vmem:[%s3033_s3 + $0x30] sm:$0xff] (!%p228_p3)   ;;  %v1855_v26 = vld [vmem:[%s3033_s3 + $0x78] sm:$0xff] (!%p228_p3)   ;;  %v1721_v51 = vsel (!%p228_p3), %vm757_vm2, 1.0, %v2077_v46  ;;  %v1723_v52 = vsel (!%p228_p3), %vm766_vm3, 1.0, %v2077_v46  ;;  %v1719_v53 = vsel (!%p228_p3), %vm747_vm4, 1.0, %v2077_v46  ;;  %vm761_vm5 = vcmp.eq.s32.totalorder (!%p228_p3), %v741_v45, 4 }
   0xe   : > { %s3041_s24 = smov (!%p269_p4, %s1679_s24), 15  ;;  %1743 = vmatpush3.bf16.msra.mxu1 %v1844_v10  ;;  %v1856_v27 = vld [vmem:[%s3033_s3 + $0x38] sm:$0xff]   ;;  %vm771_vm6 = vcmp.eq.s32.totalorder %v741_v45, 6  ;;  %v760_v55 = vadd.f32 %v1721_v51, %v755_v49  ;;  %v769_v56 = vmul.f32 -1.0, %v1723_v52  ;;  %v2220_v57 = vld [vmem:[%s3034_s4] ss:$0 sm:$0xff]  ;;  %v2222_v59 = vadd.f32 %v1719_v53, %v745_v50 }
   0xf   : > { %s1680_s29 = sshll.u32 %s3041_s24, 2  ;;  %1744 = vmatprep.subr.bf16.mxu1 %v1845_v11  ;;  %v1722_v60 = vsel %vm761_vm5, 1.0, %v2077_v46  ;;  %v1724_v61 = vsel %vm771_vm6, 1.0, %v2077_v46  ;;  %vm775_vm7 = vcmp.eq.s32.totalorder %v741_v45, 7  ;;  %s1684_s15 = sshll.u32 %s3041_s24, 3 }
  0x10   : > { %s2143_s7 = scalar_lea.vmem %s3030_s0, %s1680_s29  ;;  %1785 = vmatpush3.bf16.msra.mxu0 %v1831_v2  ;;  %s287_s14 = scalar_lea.vmem %s3032_s2, %s1680_s29  ;;  %vm751_vm8 = vcmp.ne.f32.partialorder %v2222_v59, 0.0 }
  0x11   : > { %v1837_v4 = vld [vmem:[%s2143_s7] sm:$0xff]   ;;  %1786 = vmatprep.subr.bf16.mxu0 %v1832_v3  ;;  %v1838_v20 = vld [vmem:[%s2143_s7 + $0x8] sm:$0xff]   ;;  %v1839_v21 = vld [vmem:[%s2143_s7 + $0x10] sm:$0xff]   ;;  %s2962_s18 = scalar_lea.vmem %s3035_s5, %s1684_s15 }
  0x12   : > { %1796 = vmatprep.mubr.bf16.mxu0 %v1837_v4  ;;  %1745 = vmatpush3.bf16.msra.mxu1 %v1846_v13  ;;  %v1840_v25 = vld [vmem:[%s2143_s7 + $0x18] sm:$0xff]   ;;  %v1857_v28 = vld [vmem:[%s287_s14] sm:$0xff]   ;;  %v1858_v34 = vld [vmem:[%s287_s14 + $0x8] sm:$0xff]   ;;  %v774_v4 = vadd.f32 %v1724_v61, %v769_v56 }
  0x13   : > { %1746 = vmatprep.subr.bf16.mxu1 %v1847_v14  ;;  %707 = vmatprep.mubr.bf16.mxu1 %v1857_v28  ;;  %v1859_v41 = vld [vmem:[%s287_s14 + $0x10] sm:$0xff]   ;;  %v1860_v43 = vld [vmem:[%s287_s14 + $0x18] sm:$0xff]  }
  0x14   : > { %1787 = vmatpush3.bf16.msra.mxu0 %v1832_v3  ;;  %v2227_v3 = vadd.f32 %v1722_v60, %v760_v55 }
  0x15   : > { %1788 = vmatprep.subr.bf16.mxu0 %v1833_v5 }
  0x16   : > { %1747 = vmatpush3.bf16.msra.mxu1 %v1848_v16  ;;  %vm765_vm9 = vcmp.ne.f32.partialorder %v2227_v3, 0.0 }
  0x17   : > { %1748 = vmatprep.subr.bf16.mxu1 %v1849_v17 }
  0x18   : > { %1789 = vmatpush3.bf16.msra.mxu0 %v1833_v5  ;;  %v1725_v5 = vsel %vm775_vm7, 1.0, %v2077_v46 }
  0x19   : > { %1790 = vmatprep.subr.bf16.mxu0 %v1834_v8 }
  0x1a   : > { %1749 = vmatpush3.bf16.msra.mxu1 %v1850_v18 }
  0x1b   : > { %1750 = vmatprep.subr.bf16.mxu1 %v1851_v19 }
  0x1c   : > { %1791 = vmatpush3.bf16.msra.mxu0 %v1834_v8 }
  0x1d   : > { %1792 = vmatprep.subr.bf16.mxu0 %v1835_v12 }
  0x1e   : > { %1751 = vmatpush3.bf16.msra.mxu1 %v1852_v22 }
  0x1f   : > { %1752 = vmatprep.subr.bf16.mxu1 %v1853_v23 }
  0x20   : > { %1793 = vmatpush3.bf16.msra.mxu0 %v1835_v12  ;;  %v2243_v12 = vadd.f32 %v1725_v5, %v774_v4 }
  0x21   : > { %1794 = vmatprep.subr.bf16.mxu0 %v1836_v15 }
  0x22   : > { %1753 = vmatpush3.bf16.msra.mxu1 %v1854_v24  ;;  %vm779_vm10 = vcmp.ne.f32.partialorder %v2243_v12, 0.0 }
  0x23   : > { %1754 = vmatprep.subr.bf16.mxu1 %v1855_v26 }
  0x24   : > { %1795 = vmatpush3.bf16.msra.mxu0 %v1836_v15 }
  0x26   : > { %1755 = vmatpush3.bf16.msra.mxu1 %v1856_v27 }
  0x27   : > { %1797 = vmatmul.mubr.bf16.vlgmr.msra.gmra.mrb[0].mxu0 %v1838_v20 }
  0x28   : > { %1800 = vmatprep.mubr.bf16.mxu0 %v1839_v21 }
  0x2f   : > { %1801 = vmatmul.mubr.bf16.gmra.mrb[4].mxu0 %v1840_v25 }
  0xfa   : > { %v1798_v29 = vpop.f32.mrb[0].mxu0 }
  0xfb   : > { %v446_v30 = vpop.f32.mrb[1].mxu0 }
  0xfc   : > { %v1799_v31 = vpop.f32.mrb[2].mxu0 }
  0xfd   : > { %v505_v32 = vpack.c.bf16 %v1799_v31, %v1798_v29  ;;  %v449_v33 = vpop.f32.mrb[3].mxu0 }
  0xfe   : > { %v504_v35 = vpack.c.bf16 %v449_v33, %v446_v30 }
 0x100   : > { %708 = vmatmul.mubr.bf16.vlgmr.msra.gmra.mrb[0].mxu1 %v504_v35 }
 0x101   : > { %715 = vmatprep.mubr.bf16.mxu1 %v1858_v34 }
 0x102   : > { %v1802_v36 = vpop.f32.mrb[4].mxu0 }
 0x103   : > { %v462_v37 = vpop.f32.mrb[5].mxu0 }
 0x104   : > { %v1803_v38 = vpop.f32.mrb[6].mxu0 }
 0x105   : > { %v507_v39 = vpack.c.bf16 %v1803_v38, %v1802_v36  ;;  %v465_v40 = vpop.f32.mrb[7].mxu0 }
 0x106   : > { %v506_v42 = vpack.c.bf16 %v465_v40, %v462_v37 }
 0x108   : > { %716 = vmatmul.mubr.bf16.gmra.mrb[4].mxu1 %v505_v32 }
 0x109   : > { %723 = vmatprep.mubr.bf16.mxu1 %v1859_v41 }
 0x110   : > { %724 = vmatmul.mubr.bf16.gmra.mrb[8].mxu1 %v506_v42 }
 0x111   : > { %731 = vmatprep.mubr.bf16.mxu1 %v1860_v43 }
 0x118   : > { %732 = vmatmul.mubr.bf16.gmra.mrb[12].mxu1 %v507_v39 }
 0x1d3   : > { %v1756_v54 = vpop.f32.mrb[0].mxu1 }
 0x1d4   : > { %v1757_v58 = vpop.f32.mrb[1].mxu1 }
 0x1d5   : > { %v1758_v62 = vadd.f32 %v1757_v58, %v1756_v54  ;;  %v1759_v63 = vpop.f32.mrb[2].mxu1 }
 0x1d6   : > { %v1760_v0 = vpop.f32.mrb[3].mxu1 }
 0x1d7   : > { %v2225_v1 = vadd.f32 %v1758_v62, %v2220_v57  ;;  %v1761_v2 = vadd.f32 %v1760_v0, %v1759_v63 }
 0x1d9   : > { %v2231_v6 = vadd.f32 %v1761_v2, %v2220_v57  ;;  %v780_v7 = vmul.f32 %v2222_v59, %v2225_v1  ;;  %v910_v11 = vmul.f32 %v2227_v3, %v2225_v1  ;;  %v1040_v22 = vmul.f32 %v2243_v12, %v2225_v1 }
 0x1db   : > { %v1762_v8 = vpop.f32.mrb[4].mxu1  ;;  %v2237_v9 = vsel %vm751_vm8, %v780_v7, -1e+30  ;;  %v911_v10 = vmul.f32 %v2227_v3, %v2231_v6  ;;  %v1041_v17 = vmul.f32 %v2243_v12, %v2231_v6  ;;  %v2259_v21 = vsel %vm765_vm9, %v910_v11, -1e+30 }
 0x1dc   : > { %v1763_v13 = vpop.f32.mrb[5].mxu1  ;;  %798 = vmax.xlane.f32.xlu0 %v2237_v9  ;;  %v2277_v26 = vsel %vm779_vm10, %v1040_v22, -1e+30  ;;  %v781_v27 = vmul.f32 %v2222_v59, %v2231_v6 }
 0x1dd   : > { %v1764_v14 = vadd.f32 %v1763_v13, %v1762_v8  ;;  %v1765_v15 = vpop.f32.mrb[6].mxu1  ;;  %v2249_v16 = vsel %vm765_vm9, %v911_v10, -1e+30  ;;  %v2270_v24 = vsel %vm779_vm10, %v1041_v17, -1e+30 }
 0x1de   : > { %v1766_v18 = vpop.f32.mrb[7].mxu1  ;;  %930 = vmax.xlane.f32.xlu1 %v2249_v16  ;;  %v2291_v35 = vsel %vm751_vm8, %v781_v27, -1e+30 }
 0x1df   : > { %v2255_v19 = vadd.f32 %v1764_v14, %v2220_v57  ;;  %v1767_v20 = vadd.f32 %v1766_v18, %v1765_v15 }
 0x1e0   : > { %928 = vmax.xlane.f32.xlu0 %v2259_v21 }
 0x1e1   : > { %v2266_v23 = vadd.f32 %v1767_v20, %v2220_v57  ;;  %v782_v25 = vmul.f32 %v2222_v59, %v2255_v19  ;;  %v912_v36 = vmul.f32 %v2227_v3, %v2255_v19  ;;  %v1042_v44 = vmul.f32 %v2243_v12, %v2255_v19 }
 0x1e2   : > { %1060 = vmax.xlane.f32.xlu1 %v2270_v24 }
 0x1e3   : > { %v1768_v28 = vpop.f32.mrb[8].mxu1  ;;  %v2284_v30 = vsel %vm751_vm8, %v782_v25, -1e+30  ;;  %v783_v31 = vmul.f32 %v2222_v59, %v2266_v23  ;;  %v913_v40 = vmul.f32 %v2227_v3, %v2266_v23  ;;  %v2308_v41 = vsel %vm765_vm9, %v912_v36, -1e+30 }
 0x1e4   : > { %1058 = vmax.xlane.f32.xlu0 %v2277_v26  ;;  %v1769_v29 = vpop.f32.mrb[9].mxu1  ;;  %v1043_v49 = vmul.f32 %v2243_v12, %v2266_v23  ;;  %v2327_v52 = vsel %vm779_vm10, %v1042_v44, -1e+30 }
 0x1e5   : > { %v1770_v32 = vadd.f32 %v1769_v29, %v1768_v28  ;;  %v1771_v33 = vpop.f32.mrb[10].mxu1  ;;  %v2298_v38 = vsel %vm751_vm8, %v783_v31, -1e+30  ;;  %v2318_v46 = vsel %vm765_vm9, %v913_v40, -1e+30 }
 0x1e6   : > { %802 = vmax.xlane.f32.xlu1 %v2284_v30  ;;  %v1772_v34 = vpop.f32.mrb[11].mxu1  ;;  %v2334_v55 = vsel %vm779_vm10, %v1043_v49, -1e+30 }
 0x1e7   : > { %v1773_v37 = vadd.f32 %v1772_v34, %v1771_v33  ;;  %v2301_v39 = vadd.f32 %v1770_v32, %v2220_v57 }
 0x1e8   : > { %800 = vmax.xlane.f32.xlu0 %v2291_v35 }
 0x1e9   : > { %v2311_v42 = vadd.f32 %v1773_v37, %v2220_v57  ;;  %v784_v50 = vmul.f32 %v2222_v59, %v2301_v39  ;;  %v914_v58 = vmul.f32 %v2227_v3, %v2301_v39  ;;  %v1044_v2 = vmul.f32 %v2243_v12, %v2301_v39 }
 0x1ea   : > { %804 = vmax.xlane.f32.xlu1 %v2298_v38 }
 0x1eb   : > { %v1774_v43 = vpop.f32.mrb[12].mxu1  ;;  %v785_v54 = vmul.f32 %v2222_v59, %v2311_v42  ;;  %v2338_v56 = vsel %vm751_vm8, %v784_v50, -1e+30  ;;  %v915_v61 = vmul.f32 %v2227_v3, %v2311_v42  ;;  %v2352_v62 = vsel %vm765_vm9, %v914_v58, -1e+30 }
 0x1ec   : > { %932 = vmax.xlane.f32.xlu0 %v2308_v41  ;;  %v1775_v45 = vpop.f32.mrb[13].mxu1  ;;  %v1045_v5 = vmul.f32 %v2243_v12, %v2311_v42  ;;  %v2373_v7 = vsel %vm779_vm10, %v1044_v2, -1e+30 }
 0x1ed   : > { %v1776_v47 = vadd.f32 %v1775_v45, %v1774_v43  ;;  %v1777_v48 = vpop.f32.mrb[14].mxu1  ;;  %v2345_v60 = vsel %vm751_vm8, %v785_v54, -1e+30  ;;  %v2360_v0 = vsel %vm765_vm9, %v915_v61, -1e+30 }
 0x1ee   : > { %934 = vmax.xlane.f32.xlu1 %v2318_v46  ;;  %v1778_v51 = vpop.f32.mrb[15].mxu1  ;;  %v2380_v10 = vsel %vm779_vm10, %v1045_v5, -1e+30 }
 0x1ef   : > { %v1779_v53 = vadd.f32 %v1778_v51, %v1777_v48  ;;  %v2356_v63 = vadd.f32 %v1776_v47, %v2220_v57 }
 0x1f0   : > { %1062 = vmax.xlane.f32.xlu0 %v2327_v52 }
 0x1f1   : > { %v2366_v4 = vadd.f32 %v1779_v53, %v2220_v57  ;;  %v786_v8 = vmul.f32 %v2222_v59, %v2356_v63  ;;  %v916_v13 = vmul.f32 %v2227_v3, %v2356_v63  ;;  %v1046_v18 = vmul.f32 %v2243_v12, %v2356_v63 }
 0x1f2   : > { %1064 = vmax.xlane.f32.xlu1 %v2334_v55 }
 0x1f3   : > { %v787_v57 = vmul.f32 %v2222_v59, %v2366_v4  ;;  %v2387_v11 = vsel %vm751_vm8, %v786_v8, -1e+30  ;;  %v917_v15 = vmul.f32 %v2227_v3, %v2366_v4  ;;  %v2401_v17 = vsel %vm765_vm9, %v916_v13, -1e+30 }
 0x1f4   : > { %806 = vmax.xlane.f32.xlu0 %v2338_v56  ;;  %v1047_v22 = vmul.f32 %v2243_v12, %v2366_v4  ;;  %v2415_v25 = vsel %vm779_vm10, %v1046_v18, -1e+30 }
 0x1f5   : > { %v2394_v14 = vsel %vm751_vm8, %v787_v57, -1e+30  ;;  %v2408_v20 = vsel %vm765_vm9, %v917_v15, -1e+30 }
 0x1f6   : > { %808 = vmax.xlane.f32.xlu1 %v2345_v60  ;;  %v2420_v27 = vsel %vm779_vm10, %v1047_v22, -1e+30 }
 0x1f8   : > { %936 = vmax.xlane.f32.xlu0 %v2352_v62 }
 0x1fa   : > { %938 = vmax.xlane.f32.xlu1 %v2360_v0 }
 0x1fc   : > { %1066 = vmax.xlane.f32.xlu0 %v2373_v7 }
 0x1fe   : > { %1068 = vmax.xlane.f32.xlu1 %v2380_v10 }
 0x200   : > { %810 = vmax.xlane.f32.xlu0 %v2387_v11 }
 0x202   : > { %812 = vmax.xlane.f32.xlu1 %v2394_v14 }
 0x204   : > { %940 = vmax.xlane.f32.xlu0 %v2401_v17 }
 0x206   : > { %942 = vmax.xlane.f32.xlu1 %v2408_v20 }
 0x208   : > { %1070 = vmax.xlane.f32.xlu0 %v2415_v25 }
 0x20a   : > { %1072 = vmax.xlane.f32.xlu1 %v2420_v27 }
 0x269   : > { %v799_v28 = vpop.xlane.xlu0 %798 }
 0x26a   : > { %v814_v29 = vsub.f32 %v2237_v9, %v799_v28 }
 0x26b   : > { %v931_v31 = vpop.xlane.xlu1 %930 }
 0x26c   : > { %v822_v32 = vmul.f32 1.442695, %v814_v29  ;;  %v945_v45 = vsub.f32 %v2249_v16, %v931_v31 }
 0x26d   : > { %v929_v33 = vpop.xlane.xlu0 %928 }
 0x26e   : > { %1861 = vpow2.f32 %v822_v32  ;;  %v944_v34 = vsub.f32 %v2259_v21, %v929_v33  ;;  %v954_v21 = vmul.f32 1.442695, %v945_v45 }
 0x26f   : > { %v1061_v36 = vpop.xlane.xlu1 %1060 }
 0x270   : > { %v952_v37 = vmul.f32 1.442695, %v944_v34  ;;  %v1075_v54 = vsub.f32 %v2270_v24, %v1061_v36 }
 0x271   : > { %v1059_v40 = vpop.xlane.xlu0 %1058 }
 0x272   : > { %1863 = vpow2.f32 %v952_v37  ;;  %v1074_v43 = vsub.f32 %v2277_v26, %v1059_v40 }
 0x273   : > { %v803_v44 = vpop.xlane.xlu1 %802 }
 0x274   : > { %v1082_v47 = vmul.f32 1.442695, %v1074_v43  ;;  %v816_v48 = vsub.f32 %v2284_v30, %v803_v44 }
 0x275   : > { %v801_v49 = vpop.xlane.xlu0 %800 }
 0x276   : > { %1865 = vpow2.f32 %v1082_v47  ;;  %v826_v9 = vmul.f32 1.442695, %v816_v48  ;;  %v815_v50 = vsub.f32 %v2291_v35, %v801_v49  ;;  %v1084_v35 = vmul.f32 1.442695, %v1075_v54 }
 0x277   : > { %v805_v51 = vpop.xlane.xlu1 %804 }
 0x278   : > { %v1862_v53 = vpop.eup %1861  ;;  %1867 = vpow2.f32 %v826_v9  ;;  %v824_v58 = vmul.f32 1.442695, %v815_v50  ;;  %v817_v5 = vsub.f32 %v2298_v38, %v805_v51 }
 0x279   : > { %v933_v61 = vpop.xlane.xlu0 %932  ;;  %v2432_v26 = vsel %vm751_vm8, %v1862_v53, 0.0 }
 0x27a   : > { %1869 = vpow2.f32 %v824_v58  ;;  %v946_v16 = vsub.f32 %v2308_v41, %v933_v61  ;;  %846 = vadd.xlane.f32.xlu0 %v2432_v26  ;;  %v828_v18 = vmul.f32 1.442695, %v817_v5 }
 0x27b   : > { %v935_v30 = vpop.xlane.xlu1 %934  ;;  %1871 = vpow2.f32 %v954_v21 }
 0x27c   : > { %v1864_v2 = vpop.eup %1863  ;;  %v956_v8 = vmul.f32 1.442695, %v946_v16  ;;  %v947_v22 = vsub.f32 %v2318_v46, %v935_v30 }
 0x27d   : > { %v1063_v24 = vpop.xlane.xlu0 %1062  ;;  %v2439_v57 = vsel %vm765_vm9, %v1864_v2, 0.0 }
 0x27e   : > { %1873 = vpow2.f32 %v956_v8  ;;  %v1076_v13 = vsub.f32 %v2327_v52, %v1063_v24  ;;  %976 = vadd.xlane.f32.xlu0 %v2439_v57  ;;  %v958_v34 = vmul.f32 1.442695, %v947_v22 }
 0x27f   : > { %v1065_v41 = vpop.xlane.xlu1 %1064  ;;  %1875 = vpow2.f32 %v1084_v35 }
 0x280   : > { %v1866_v15 = vpop.eup %1865  ;;  %v1086_v28 = vmul.f32 1.442695, %v1076_v13  ;;  %v1077_v36 = vsub.f32 %v2334_v55, %v1065_v41 }
 0x281   : > { %v807_v29 = vpop.xlane.xlu0 %806  ;;  %v2446_v38 = vsel %vm779_vm10, %v1866_v15, 0.0 }
 0x282   : > { %v1868_v31 = vpop.eup %1867  ;;  %1877 = vpow2.f32 %v1086_v28  ;;  %v818_v32 = vsub.f32 %v2338_v56, %v807_v29  ;;  %1106 = vadd.xlane.f32.xlu0 %v2446_v38  ;;  %v1088_v47 = vmul.f32 1.442695, %v1077_v36 }
 0x283   : > { %v809_v52 = vpop.xlane.xlu1 %808  ;;  %1879 = vpow2.f32 %v828_v18  ;;  %v2457_v43 = vsel %vm751_vm8, %v1868_v31, 0.0 }
 0x284   : > { %v1870_v33 = vpop.eup %1869  ;;  %v830_v37 = vmul.f32 1.442695, %v818_v32  ;;  %v819_v48 = vsub.f32 %v2345_v60, %v809_v52 }
 0x285   : > { %v937_v46 = vpop.xlane.xlu0 %936  ;;  %v2453_v40 = vsel %vm751_vm8, %v1870_v33, 0.0  ;;  %v1872_v44 = vpop.eup %1871 }
 0x286   : > { %1881 = vpow2.f32 %v830_v37  ;;  %v948_v56 = vsub.f32 %v2352_v62, %v937_v46  ;;  %848 = vadd.xlane.f32.xlu1 %v2453_v40  ;;  %850 = vadd.xlane.f32.xlu0 %v2457_v43  ;;  %v2465_v50 = vsel %vm765_vm9, %v1872_v44, 0.0  ;;  %v832_v54 = vmul.f32 1.442695, %v819_v48 }
 0x287   : > { %v939_v45 = vpop.xlane.xlu1 %938  ;;  %1883 = vpow2.f32 %v958_v34 }
 0x288   : > { %v1874_v55 = vpop.eup %1873  ;;  %v960_v49 = vmul.f32 1.442695, %v948_v56  ;;  %v949_v58 = vsub.f32 %v2360_v0, %v939_v45 }
 0x289   : > { %v1067_v9 = vpop.xlane.xlu0 %1066  ;;  %v2469_v51 = vsel %vm765_vm9, %v1874_v55, 0.0  ;;  %v1876_v62 = vpop.eup %1875 }
 0x28a   : > { %1885 = vpow2.f32 %v960_v49  ;;  %v1078_v53 = vsub.f32 %v2373_v7, %v1067_v9  ;;  %978 = vadd.xlane.f32.xlu1 %v2465_v50  ;;  %980 = vadd.xlane.f32.xlu0 %v2469_v51  ;;  %v2477_v30 = vsel %vm779_vm10, %v1876_v62, 0.0  ;;  %v962_v8 = vmul.f32 1.442695, %v949_v58 }
 0x28b   : > { %v1069_v21 = vpop.xlane.xlu1 %1068  ;;  %1887 = vpow2.f32 %v1088_v47 }
 0x28c   : > { %v1878_v60 = vpop.eup %1877  ;;  %v1090_v61 = vmul.f32 1.442695, %v1078_v53  ;;  %v1079_v24 = vsub.f32 %v2380_v10, %v1069_v21 }
 0x28d   : > { %v811_v16 = vpop.xlane.xlu0 %810  ;;  %v2481_v2 = vsel %vm779_vm10, %v1878_v60, 0.0  ;;  %v1880_v7 = vpop.eup %1879 }
 0x28e   : > { %1889 = vpow2.f32 %v1090_v61  ;;  %v820_v35 = vsub.f32 %v2387_v11, %v811_v16  ;;  %1108 = vadd.xlane.f32.xlu1 %v2477_v30  ;;  %1110 = vadd.xlane.f32.xlu0 %v2481_v2  ;;  %v2489_v15 = vsel %vm751_vm8, %v1880_v7, 0.0  ;;  %v1092_v29 = vmul.f32 1.442695, %v1079_v24 }
 0x28f   : > { %v813_v5 = vpop.xlane.xlu1 %812  ;;  %1891 = vpow2.f32 %v832_v54 }
 0x290   : > { %v1882_v0 = vpop.eup %1881  ;;  %v834_v13 = vmul.f32 1.442695, %v820_v35  ;;  %v821_v31 = vsub.f32 %v2394_v14, %v813_v5 }
 0x291   : > { %v941_v41 = vpop.xlane.xlu0 %940  ;;  %v2493_v18 = vsel %vm751_vm8, %v1882_v0, 0.0  ;;  %v1884_v11 = vpop.eup %1883 }
 0x292   : > { %1893 = vpow2.f32 %v834_v13  ;;  %v950_v22 = vsub.f32 %v2401_v17, %v941_v41  ;;  %852 = vadd.xlane.f32.xlu1 %v2489_v15  ;;  %854 = vadd.xlane.f32.xlu0 %v2493_v18  ;;  %v2501_v33 = vsel %vm765_vm9, %v1884_v11, 0.0  ;;  %v836_v14 = vmul.f32 1.442695, %v821_v31 }
 0x293   : > { %v943_v28 = vpop.xlane.xlu1 %942  ;;  %1895 = vpow2.f32 %v962_v8 }
 0x294   : > { %v1886_v10 = vpop.eup %1885  ;;  %v964_v32 = vmul.f32 1.442695, %v950_v22  ;;  %v951_v46 = vsub.f32 %v2408_v20, %v943_v28 }
 0x295   : > { %v1071_v52 = vpop.xlane.xlu0 %1070  ;;  %v2505_v34 = vsel %vm765_vm9, %v1886_v10, 0.0  ;;  %v1888_v17 = vpop.eup %1887 }
 0x296   : > { %1897 = vpow2.f32 %v964_v32  ;;  %v1080_v36 = vsub.f32 %v2415_v25, %v1071_v52  ;;  %982 = vadd.xlane.f32.xlu1 %v2501_v33  ;;  %984 = vadd.xlane.f32.xlu0 %v2505_v34  ;;  %v2513_v45 = vsel %vm779_vm10, %v1888_v17, 0.0  ;;  %v966_v48 = vmul.f32 1.442695, %v951_v46 }
 0x297   : > { %1899 = vpow2.f32 %v1092_v29  ;;  %v1073_v56 = vpop.xlane.xlu1 %1072 }
 0x298   : > { %v1890_v37 = vpop.eup %1889  ;;  %v1094_v44 = vmul.f32 1.442695, %v1080_v36  ;;  %v1081_v20 = vsub.f32 %v2420_v27, %v1073_v56 }
 0x299   : > { %v2517_v55 = vsel %vm779_vm10, %v1890_v37, 0.0  ;;  %v1892_v25 = vpop.eup %1891 }
 0x29a   : > { %1901 = vpow2.f32 %v1094_v44  ;;  %1112 = vadd.xlane.f32.xlu1 %v2513_v45  ;;  %1114 = vadd.xlane.f32.xlu0 %v2517_v55  ;;  %v2524_v49 = vsel %vm751_vm8, %v1892_v25, 0.0  ;;  %v1096_v21 = vmul.f32 1.442695, %v1081_v20 }
 0x29b   : > { %1903 = vpow2.f32 %v836_v14 }
 0x29c   : > { %v1894_v47 = vpop.eup %1893  ;;  %1905 = vpow2.f32 %v966_v48 }
 0x29d   : > { %v2528_v9 = vsel %vm751_vm8, %v1894_v47, 0.0  ;;  %v1896_v62 = vpop.eup %1895  ;;  %1907 = vpow2.f32 %v1096_v21 }
 0x29e   : > { %856 = vadd.xlane.f32.xlu1 %v2524_v49  ;;  %858 = vadd.xlane.f32.xlu0 %v2528_v9  ;;  %v2534_v60 = vsel %vm765_vm9, %v1896_v62, 0.0 }
 0x2a0   : > { %v1898_v53 = vpop.eup %1897 }
 0x2a1   : > { %v2538_v27 = vsel %vm765_vm9, %v1898_v53, 0.0  ;;  %v1900_v54 = vpop.eup %1899 }
 0x2a2   : > { %986 = vadd.xlane.f32.xlu1 %v2534_v60  ;;  %988 = vadd.xlane.f32.xlu0 %v2538_v27  ;;  %v2544_v61 = vsel %vm779_vm10, %v1900_v54, 0.0 }
 0x2a4   : > { %v1902_v58 = vpop.eup %1901 }
 0x2a5   : > { %v2548_v16 = vsel %vm779_vm10, %v1902_v58, 0.0  ;;  %v1904_v7 = vpop.eup %1903 }
 0x2a6   : > { %1116 = vadd.xlane.f32.xlu1 %v2544_v61  ;;  %1118 = vadd.xlane.f32.xlu0 %v2548_v16  ;;  %v2554_v35 = vsel %vm751_vm8, %v1904_v7, 0.0  ;;  %v1906_v5 = vpop.eup %1905 }
 0x2a7   : > { %v2559_v0 = vsel %vm765_vm9, %v1906_v5, 0.0  ;;  %v1908_v8 = vpop.eup %1907 }
 0x2a8   : > { %v2564_v24 = vsel %vm779_vm10, %v1908_v8, 0.0 }
 0x2aa   : > { %860 = vadd.xlane.f32.xlu1 %v2554_v35 }
 0x2ae   : > { %990 = vadd.xlane.f32.xlu1 %v2559_v0 }
 0x2b2   : > { %1120 = vadd.xlane.f32.xlu1 %v2564_v24 }
 0x307   : > { %v847_v13 = vpop.xlane.xlu0 %846 }
 0x308   : > { %v862_v41 = vmax.f32 %v847_v13, 1e-30 }
 0x30a   : > { %1909 = vrcp.f32 %v862_v41 }
 0x30b   : > { %v977_v11 = vpop.xlane.xlu0 %976 }
 0x30c   : > { %v992_v22 = vmax.f32 %v977_v11, 1e-30 }
 0x30e   : > { %1911 = vrcp.f32 %v992_v22 }
 0x30f   : > { %v1107_v28 = vpop.xlane.xlu0 %1106 }
 0x310   : > { %v1122_v10 = vmax.f32 %v1107_v28, 1e-30 }
 0x312   : > { %1913 = vrcp.f32 %v1122_v10 }
 0x313   : > { %v849_v29 = vpop.xlane.xlu1 %848  ;;  %v851_v31 = vpop.xlane.xlu0 %850 }
 0x314   : > { %v1910_v32 = vpop.eup %1909  ;;  %v863_v52 = vmax.f32 %v849_v29, 1e-30  ;;  %v864_v17 = vmax.f32 %v851_v31, 1e-30 }
 0x315   : > { %v878_v36 = vmul.f32 %v1910_v32, %v2432_v26 }
 0x316   : > { %1915 = vrcp.f32 %v863_v52 }
 0x317   : > { %1917 = vrcp.f32 %v864_v17  ;;  %v979_v37 = vpop.xlane.xlu1 %978  ;;  %v981_v14 = vpop.xlane.xlu0 %980  ;;  %v886_v47 = vmul.f32 %v878_v36, %v2222_v59 }
 0x318   : > { %v1912_v46 = vpop.eup %1911  ;;  %v993_v44 = vmax.f32 %v979_v37, 1e-30  ;;  %v994_v56 = vmax.f32 %v981_v14, 1e-30 }
 0x319   : > { %v1008_v25 = vmul.f32 %v1912_v46, %v2439_v57  ;;  %v894_v7 = vmul.f32 0.5, %v886_v47 }
 0x31a   : > { %1919 = vrcp.f32 %v993_v44 }
 0x31b   : > { %v1016_v48 = vmul.f32 %v1008_v25, %v2227_v3  ;;  %1921 = vrcp.f32 %v994_v56  ;;  %v1109_v20 = vpop.xlane.xlu1 %1108  ;;  %v1111_v62 = vpop.xlane.xlu0 %1110 }
 0x31c   : > { %v1914_v53 = vpop.eup %1913  ;;  %v1123_v21 = vmax.f32 %v1109_v20, 1e-30  ;;  %v1124_v54 = vmax.f32 %v1111_v62, 1e-30 }
 0x31d   : > { %v1024_v26 = vmul.f32 0.5, %v1016_v48  ;;  %v1138_v58 = vmul.f32 %v1914_v53, %v2446_v38 }
 0x31e   : > { %1923 = vrcp.f32 %v1123_v21 }
 0x31f   : > { %v1146_v5 = vmul.f32 %v1138_v58, %v2243_v12  ;;  %1925 = vrcp.f32 %v1124_v54  ;;  %v853_v57 = vpop.xlane.xlu1 %852  ;;  %v855_v8 = vpop.xlane.xlu0 %854  ;;  %v1032_v28 = vadd.f32 %v1024_v26, %v894_v7 }
 0x320   : > { %v1916_v13 = vpop.eup %1915  ;;  %v865_v41 = vmax.f32 %v853_v57, 1e-30  ;;  %v866_v11 = vmax.f32 %v855_v8, 1e-30 }
 0x321   : > { %v1918_v22 = vpop.eup %1917  ;;  %v1154_v10 = vmul.f32 0.5, %v1146_v5  ;;  %v879_v29 = vmul.f32 %v1916_v13, %v2453_v40 }
 0x322   : > { %1927 = vrcp.f32 %v865_v41  ;;  %v880_v17 = vmul.f32 %v1918_v22, %v2457_v43 }
 0x323   : > { %1929 = vrcp.f32 %v866_v11  ;;  %v983_v31 = vpop.xlane.xlu1 %982  ;;  %v985_v32 = vpop.xlane.xlu0 %984  ;;  %v1162_v38 = vadd.f32 %v1154_v10, %v1032_v28  ;;  %v887_v40 = vmul.f32 %v879_v29, %v2222_v59 }
 0x324   : > { %v1920_v52 = vpop.eup %1919  ;;  %v995_v36 = vmax.f32 %v983_v31, 1e-30  ;;  %v996_v37 = vmax.f32 %v985_v32, 1e-30  ;;  %v888_v62 = vmul.f32 %v880_v17, %v2222_v59 }
 0x325   : > { %v1922_v14 = vpop.eup %1921  ;;  %v1009_v46 = vmul.f32 %v1920_v52, %v2465_v50  ;;  %v2577_v44 = vadd.f32 %v1162_v38, %v2225_v1  ;;  %v895_v57 = vmul.f32 0.5, %v887_v40 }
 0x326   : > { %v1010_v56 = vmul.f32 %v1922_v14, %v2469_v51  ;;  %1931 = vrcp.f32 %v995_v36  ;;  %v896_v11 = vmul.f32 0.5, %v888_v62 }
 0x327   : > { %v1017_v25 = vmul.f32 %v1009_v46, %v2227_v3  ;;  %1933 = vrcp.f32 %v996_v37  ;;  %v1113_v47 = vpop.xlane.xlu1 %1112  ;;  %v1115_v48 = vpop.xlane.xlu0 %1114  ;;  %v1178_v43 = vmul.f32 %v2577_v44, %v2222_v59  ;;  %v1306_v58 = vmul.f32 %v2577_v44, %v2227_v3 }
 0x328   : > { %v1924_v20 = vpop.eup %1923  ;;  %v1018_v50 = vmul.f32 %v1010_v56, %v2227_v3  ;;  %v1125_v1 = vmax.f32 %v1113_v47, 1e-30  ;;  %v1126_v53 = vmax.f32 %v1115_v48, 1e-30 }
 0x329   : > { %v1926_v21 = vpop.eup %1925  ;;  %v1025_v51 = vmul.f32 0.5, %v1017_v25  ;;  %v1139_v54 = vmul.f32 %v1924_v20, %v2477_v30  ;;  %v2589_v26 = vsel %vm751_vm8, %v1178_v43, -1e+30  ;;  %v2599_v31 = vsel %vm765_vm9, %v1306_v58, -1e+30 }
 0x32a   : > { %v1026_v7 = vmul.f32 0.5, %v1018_v50  ;;  %v1140_v5 = vmul.f32 %v1926_v21, %v2481_v2  ;;  %1935 = vrcp.f32 %v1125_v1  ;;  %1194 = vmax.xlane.f32.xlu0 %v2589_v26  ;;  %v1434_v2 = vmul.f32 %v2577_v44, %v2243_v12 }
 0x32b   : > { %v1147_v8 = vmul.f32 %v1139_v54, %v2243_v12  ;;  %1937 = vrcp.f32 %v1126_v53  ;;  %v857_v13 = vpop.xlane.xlu1 %856  ;;  %v859_v41 = vpop.xlane.xlu0 %858  ;;  %v1033_v32 = vadd.f32 %v1025_v51, %v895_v57 }
 0x32c   : > { %v1928_v30 = vpop.eup %1927  ;;  %v1148_v22 = vmul.f32 %v1140_v5, %v2243_v12  ;;  %v867_v28 = vmax.f32 %v857_v13, 1e-30  ;;  %v868_v10 = vmax.f32 %v859_v41, 1e-30  ;;  %v1034_v17 = vadd.f32 %v1026_v7, %v896_v11 }
 0x32d   : > { %v1930_v29 = vpop.eup %1929  ;;  %v1155_v38 = vmul.f32 0.5, %v1147_v8  ;;  %v881_v52 = vmul.f32 %v1928_v30, %v2489_v15  ;;  %v2609_v15 = vsel %vm779_vm10, %v1434_v2, -1e+30 }
 0x32e   : > { %1939 = vrcp.f32 %v867_v28  ;;  %1322 = vmax.xlane.f32.xlu0 %v2599_v31  ;;  %v1156_v36 = vmul.f32 0.5, %v1148_v22  ;;  %v882_v37 = vmul.f32 %v1930_v29, %v2493_v18 }
 0x32f   : > { %1941 = vrcp.f32 %v868_v10  ;;  %v987_v14 = vpop.xlane.xlu1 %986  ;;  %v989_v46 = vpop.xlane.xlu0 %988  ;;  %v1163_v56 = vadd.f32 %v1155_v38, %v1033_v32  ;;  %v889_v18 = vmul.f32 %v881_v52, %v2222_v59 }
 0x330   : > { %v1932_v40 = vpop.eup %1931  ;;  %v997_v25 = vmax.f32 %v987_v14, 1e-30  ;;  %v998_v47 = vmax.f32 %v989_v46, 1e-30  ;;  %v1164_v48 = vadd.f32 %v1156_v36, %v1034_v17  ;;  %v890_v53 = vmul.f32 %v882_v37, %v2222_v59 }
 0x331   : > { %v1934_v43 = vpop.eup %1933  ;;  %v1011_v20 = vmul.f32 %v1932_v40, %v2501_v33  ;;  %v2612_v62 = vadd.f32 %v1163_v56, %v2231_v6  ;;  %v897_v30 = vmul.f32 0.5, %v889_v18 }
 0x332   : > { %v1012_v50 = vmul.f32 %v1934_v43, %v2505_v34  ;;  %1943 = vrcp.f32 %v997_v25  ;;  %1450 = vmax.xlane.f32.xlu0 %v2609_v15  ;;  %v2618_v1 = vadd.f32 %v1164_v48, %v2255_v19  ;;  %v898_v32 = vmul.f32 0.5, %v890_v53 }
 0x333   : > { %v1019_v33 = vmul.f32 %v1011_v20, %v2227_v3  ;;  %1945 = vrcp.f32 %v998_v47  ;;  %v1117_v21 = vpop.xlane.xlu1 %1116  ;;  %v1119_v51 = vpop.xlane.xlu0 %1118  ;;  %v1179_v6 = vmul.f32 %v2612_v62, %v2222_v59  ;;  %v1307_v41 = vmul.f32 %v2612_v62, %v2227_v3 }
 0x334   : > { %v1936_v54 = vpop.eup %1935  ;;  %v1020_v58 = vmul.f32 %v1012_v50, %v2227_v3  ;;  %v1127_v34 = vmax.f32 %v1117_v21, 1e-30  ;;  %v1128_v7 = vmax.f32 %v1119_v51, 1e-30  ;;  %v1180_v5 = vmul.f32 %v2618_v1, %v2222_v59 }
 0x335   : > { %v1938_v19 = vpop.eup %1937  ;;  %v1027_v57 = vmul.f32 0.5, %v1019_v33  ;;  %v1141_v8 = vmul.f32 %v1936_v54, %v2513_v45  ;;  %v2630_v13 = vsel %vm751_vm8, %v1179_v6, -1e+30  ;;  %v1308_v29 = vmul.f32 %v2618_v1, %v2227_v3 }
 0x336   : > { %v1142_v11 = vmul.f32 %v1938_v19, %v2517_v55  ;;  %1947 = vrcp.f32 %v1127_v34  ;;  %1196 = vmax.xlane.f32.xlu1 %v2630_v13  ;;  %v2638_v22 = vsel %vm751_vm8, %v1180_v5, -1e+30  ;;  %v1028_v28 = vmul.f32 0.5, %v1020_v58 }
 0x337   : > { %v1149_v45 = vmul.f32 %v1141_v8, %v2243_v12  ;;  %1949 = vrcp.f32 %v1128_v7  ;;  %1198 = vmax.xlane.f32.xlu0 %v2638_v22  ;;  %v861_v10 = vpop.xlane.xlu1 %860  ;;  %v2647_v17 = vsel %vm765_vm9, %v1307_v41, -1e+30  ;;  %v1435_v36 = vmul.f32 %v2612_v62, %v2243_v12 }
 0x338   : > { %v1940_v2 = vpop.eup %1939  ;;  %v1150_v55 = vmul.f32 %v1142_v11, %v2243_v12  ;;  %v869_v38 = vmax.f32 %v861_v10, 1e-30  ;;  %v1035_v37 = vadd.f32 %v1027_v57, %v897_v30  ;;  %v2654_v46 = vsel %vm765_vm9, %v1308_v29, -1e+30 }
 0x339   : > { %v1942_v52 = vpop.eup %1941  ;;  %v1157_v14 = vmul.f32 0.5, %v1149_v45  ;;  %v1436_v56 = vmul.f32 %v2618_v1, %v2243_v12  ;;  %v883_v40 = vmul.f32 %v1940_v2, %v2524_v49  ;;  %v1036_v48 = vadd.f32 %v1028_v28, %v898_v32 }
 0x33a   : > { %1951 = vrcp.f32 %v869_v38  ;;  %1324 = vmax.xlane.f32.xlu1 %v2647_v17  ;;  %v1158_v43 = vmul.f32 0.5, %v1150_v55  ;;  %v884_v18 = vmul.f32 %v1942_v52, %v2528_v9  ;;  %v2664_v21 = vsel %vm779_vm10, %v1435_v36, -1e+30 }
 0x33b   : > { %1326 = vmax.xlane.f32.xlu0 %v2654_v46  ;;  %v991_v25 = vpop.xlane.xlu1 %990  ;;  %v1165_v47 = vadd.f32 %v1157_v14, %v1035_v37  ;;  %v2673_v9 = vsel %vm779_vm10, %v1436_v56, -1e+30  ;;  %v891_v54 = vmul.f32 %v883_v40, %v2222_v59 }
 0x33c   : > { %v1944_v20 = vpop.eup %1943  ;;  %v999_v50 = vmax.f32 %v991_v25, 1e-30  ;;  %v1166_v49 = vadd.f32 %v1158_v43, %v1036_v48  ;;  %v892_v7 = vmul.f32 %v884_v18, %v2222_v59 }
 0x33d   : > { %v1946_v53 = vpop.eup %1945  ;;  %v1013_v33 = vmul.f32 %v1944_v20, %v2534_v60  ;;  %v2667_v51 = vadd.f32 %v1165_v47, %v2266_v23  ;;  %v899_v10 = vmul.f32 0.5, %v891_v54 }
 0x33e   : > { %v1014_v6 = vmul.f32 %v1946_v53, %v2538_v27  ;;  %1953 = vrcp.f32 %v999_v50  ;;  %1452 = vmax.xlane.f32.xlu1 %v2664_v21  ;;  %v2681_v34 = vadd.f32 %v1166_v49, %v2301_v39  ;;  %v900_v55 = vmul.f32 0.5, %v892_v7 }
 0x33f   : > { %v1021_v60 = vmul.f32 %v1013_v33, %v2227_v3  ;;  %1454 = vmax.xlane.f32.xlu0 %v2673_v9  ;;  %v1121_v58 = vpop.xlane.xlu1 %1120  ;;  %v1181_v23 = vmul.f32 %v2667_v51, %v2222_v59  ;;  %v1309_v57 = vmul.f32 %v2667_v51, %v2227_v3  ;;  %v1437_v52 = vmul.f32 %v2667_v51, %v2243_v12 }
 0x340   : > { %v1948_v27 = vpop.eup %1947  ;;  %v1022_v5 = vmul.f32 %v1014_v6, %v2227_v3  ;;  %v1129_v19 = vmax.f32 %v1121_v58, 1e-30  ;;  %v1182_v39 = vmul.f32 %v2681_v34, %v2222_v59  ;;  %v1438_v47 = vmul.f32 %v2681_v34, %v2243_v12 }
 0x341   : > { %v1950_v8 = vpop.eup %1949  ;;  %v1029_v41 = vmul.f32 0.5, %v1021_v60  ;;  %v1143_v30 = vmul.f32 %v1948_v27, %v2544_v61  ;;  %v2690_v11 = vsel %vm751_vm8, %v1181_v23, -1e+30  ;;  %v1310_v61 = vmul.f32 %v2681_v34, %v2227_v3 }
 0x342   : > { %v1030_v28 = vmul.f32 0.5, %v1022_v5  ;;  %v1144_v45 = vmul.f32 %v1950_v8, %v2548_v16  ;;  %1955 = vrcp.f32 %v1129_v19  ;;  %1200 = vmax.xlane.f32.xlu1 %v2690_v11  ;;  %v2699_v2 = vsel %vm751_vm8, %v1182_v39, -1e+30 }
 0x343   : > { %v1151_v29 = vmul.f32 %v1143_v30, %v2243_v12  ;;  %1202 = vmax.xlane.f32.xlu0 %v2699_v2  ;;  %v2707_v16 = vsel %vm765_vm9, %v1309_v57, -1e+30  ;;  %v1037_v36 = vadd.f32 %v1029_v41, %v899_v10  ;;  %v2715_v25 = vsel %vm765_vm9, %v1310_v61, -1e+30 }
 0x344   : > { %v1952_v32 = vpop.eup %1951  ;;  %v1152_v38 = vmul.f32 %v1144_v45, %v2243_v12  ;;  %v1038_v14 = vadd.f32 %v1030_v28, %v900_v55  ;;  %v2723_v50 = vsel %vm779_vm10, %v1437_v52, -1e+30  ;;  %v2736_v6 = vsel %vm779_vm10, %v1438_v47, -1e+30 }
 0x345   : > { %v1159_v37 = vmul.f32 0.5, %v1151_v29  ;;  %v885_v40 = vmul.f32 %v1952_v32, %v2554_v35 }
 0x346   : > { %1328 = vmax.xlane.f32.xlu1 %v2707_v16  ;;  %v1160_v56 = vmul.f32 0.5, %v1152_v38 }
 0x347   : > { %v1167_v48 = vadd.f32 %v1159_v37, %v1037_v36  ;;  %1330 = vmax.xlane.f32.xlu0 %v2715_v25  ;;  %v893_v33 = vmul.f32 %v885_v40, %v2222_v59 }
 0x348   : > { %v1954_v43 = vpop.eup %1953  ;;  %v1168_v20 = vadd.f32 %v1160_v56, %v1038_v14 }
 0x349   : > { %v1015_v18 = vmul.f32 %v1954_v43, %v2559_v0  ;;  %v2726_v35 = vadd.f32 %v1167_v48, %v2311_v42  ;;  %v901_v7 = vmul.f32 0.5, %v893_v33 }
 0x34a   : > { %1456 = vmax.xlane.f32.xlu1 %v2723_v50  ;;  %v2730_v53 = vadd.f32 %v1168_v20, %v2356_v63 }
 0x34b   : > { %v1023_v49 = vmul.f32 %v1015_v18, %v2227_v3  ;;  %v1183_v0 = vmul.f32 %v2726_v35, %v2222_v59  ;;  %1458 = vmax.xlane.f32.xlu0 %v2736_v6  ;;  %v1311_v23 = vmul.f32 %v2726_v35, %v2227_v3  ;;  %v1439_v57 = vmul.f32 %v2726_v35, %v2243_v12 }
 0x34c   : > { %v1956_v54 = vpop.eup %1955  ;;  %v1184_v42 = vmul.f32 %v2730_v53, %v2222_v59  ;;  %v1312_v19 = vmul.f32 %v2730_v53, %v2227_v3  ;;  %v1440_v39 = vmul.f32 %v2730_v53, %v2243_v12 }
 0x34d   : > { %v1031_v60 = vmul.f32 0.5, %v1023_v49  ;;  %v1145_v63 = vmul.f32 %v1956_v54, %v2564_v24  ;;  %v2746_v58 = vsel %vm751_vm8, %v1183_v0, -1e+30  ;;  %v2761_v24 = vsel %vm765_vm9, %v1311_v23, -1e+30 }
 0x34e   : > { %1204 = vmax.xlane.f32.xlu1 %v2746_v58  ;;  %v2753_v27 = vsel %vm751_vm8, %v1184_v42, -1e+30  ;;  %v2768_v30 = vsel %vm765_vm9, %v1312_v19, -1e+30  ;;  %v2775_v45 = vsel %vm779_vm10, %v1439_v57, -1e+30 }
 0x34f   : > { %v1153_v5 = vmul.f32 %v1145_v63, %v2243_v12  ;;  %1206 = vmax.xlane.f32.xlu0 %v2753_v27  ;;  %v1039_v8 = vadd.f32 %v1031_v60, %v901_v7  ;;  %v2783_v29 = vsel %vm779_vm10, %v1440_v39, -1e+30 }
 0x351   : > { %v1161_v41 = vmul.f32 0.5, %v1153_v5 }
 0x352   : > { %1332 = vmax.xlane.f32.xlu1 %v2761_v24 }
 0x353   : > { %v1169_v28 = vadd.f32 %v1161_v41, %v1039_v8  ;;  %1334 = vmax.xlane.f32.xlu0 %v2768_v30 }
 0x355   : > { %v2778_v10 = vadd.f32 %v1169_v28, %v2366_v4 }
 0x356   : > { %1460 = vmax.xlane.f32.xlu1 %v2775_v45 }
 0x357   : > { %v1185_v61 = vmul.f32 %v2778_v10, %v2222_v59  ;;  %1462 = vmax.xlane.f32.xlu0 %v2783_v29  ;;  %v1313_v55 = vmul.f32 %v2778_v10, %v2227_v3  ;;  %v1441_v38 = vmul.f32 %v2778_v10, %v2243_v12 }
 0x359   : > { %v2790_v32 = vsel %vm751_vm8, %v1185_v61, -1e+30  ;;  %v2797_v4 = vsel %vm765_vm9, %v1313_v55, -1e+30  ;;  %v2804_v52 = vsel %vm779_vm10, %v1441_v38, -1e+30 }
 0x35a   : > { %1208 = vmax.xlane.f32.xlu1 %v2790_v32 }
 0x35e   : > { %1336 = vmax.xlane.f32.xlu1 %v2797_v4 }
 0x362   : > { %1464 = vmax.xlane.f32.xlu1 %v2804_v52 }
 0x3b7   : > { %v1195_v36 = vpop.xlane.xlu0 %1194 }
 0x3b8   : > { %v1210_v37 = vsub.f32 %v2589_v26, %v1195_v36 }
 0x3ba   : > { %v1218_v14 = vmul.f32 1.442695, %v1210_v37 }
 0x3bb   : > { %v1323_v56 = vpop.xlane.xlu0 %1322 }
 0x3bc   : > { %1957 = vpow2.f32 %v1218_v14  ;;  %v1338_v40 = vsub.f32 %v2599_v31, %v1323_v56 }
 0x3be   : > { %v1346_v47 = vmul.f32 1.442695, %v1338_v40 }
 0x3bf   : > { %v1451_v48 = vpop.xlane.xlu0 %1450 }
 0x3c0   : > { %1959 = vpow2.f32 %v1346_v47  ;;  %v1466_v43 = vsub.f32 %v2609_v15, %v1451_v48 }
 0x3c2   : > { %v1474_v20 = vmul.f32 1.442695, %v1466_v43 }
 0x3c3   : > { %v1197_v18 = vpop.xlane.xlu1 %1196 }
 0x3c4   : > { %1961 = vpow2.f32 %v1474_v20  ;;  %v1211_v33 = vsub.f32 %v2630_v13, %v1197_v18  ;;  %v1199_v49 = vpop.xlane.xlu0 %1198 }
 0x3c5   : > { %v1212_v0 = vsub.f32 %v2638_v22, %v1199_v49 }
 0x3c6   : > { %v1958_v54 = vpop.eup %1957  ;;  %v1220_v26 = vmul.f32 1.442695, %v1211_v33 }
 0x3c7   : > { %v1222_v42 = vmul.f32 1.442695, %v1212_v0  ;;  %v1325_v60 = vpop.xlane.xlu1 %1324  ;;  %v2814_v31 = vsel %vm751_vm8, %v1958_v54, 0.0 }
 0x3c8   : > { %1963 = vpow2.f32 %v1220_v26  ;;  %v1339_v63 = vsub.f32 %v2647_v17, %v1325_v60  ;;  %v1327_v15 = vpop.xlane.xlu0 %1326  ;;  %1242 = vadd.xlane.f32.xlu0 %v2814_v31 }
 0x3c9   : > { %1965 = vpow2.f32 %v1222_v42  ;;  %v1340_v13 = vsub.f32 %v2654_v46, %v1327_v15 }
 0x3ca   : > { %v1960_v23 = vpop.eup %1959  ;;  %v1348_v7 = vmul.f32 1.442695, %v1339_v63 }
 0x3cb   : > { %v1350_v22 = vmul.f32 1.442695, %v1340_v13  ;;  %v1453_v5 = vpop.xlane.xlu1 %1452  ;;  %v2821_v19 = vsel %vm765_vm9, %v1960_v23, 0.0 }
 0x3cc   : > { %1967 = vpow2.f32 %v1348_v7  ;;  %v1467_v57 = vsub.f32 %v2664_v21, %v1453_v5  ;;  %v1455_v8 = vpop.xlane.xlu0 %1454  ;;  %1370 = vadd.xlane.f32.xlu0 %v2821_v19 }
 0x3cd   : > { %1969 = vpow2.f32 %v1350_v22  ;;  %v1468_v17 = vsub.f32 %v2673_v9, %v1455_v8 }
 0x3ce   : > { %v1962_v41 = vpop.eup %1961  ;;  %v1476_v39 = vmul.f32 1.442695, %v1467_v57 }
 0x3cf   : > { %v1478_v46 = vmul.f32 1.442695, %v1468_v17  ;;  %v1201_v28 = vpop.xlane.xlu1 %1200  ;;  %v2828_v61 = vsel %vm779_vm10, %v1962_v41, 0.0 }
 0x3d0   : > { %1971 = vpow2.f32 %v1476_v39  ;;  %v1213_v55 = vsub.f32 %v2690_v11, %v1201_v28  ;;  %1498 = vadd.xlane.f32.xlu0 %v2828_v61  ;;  %v1203_v21 = vpop.xlane.xlu0 %1202 }
 0x3d1   : > { %1973 = vpow2.f32 %v1478_v46  ;;  %v1214_v37 = vsub.f32 %v2699_v2, %v1203_v21 }
 0x3d2   : > { %v1964_v38 = vpop.eup %1963  ;;  %v1224_v36 = vmul.f32 1.442695, %v1213_v55 }
 0x3d3   : > { %v1966_v9 = vpop.eup %1965  ;;  %v1329_v14 = vpop.xlane.xlu1 %1328  ;;  %v2835_v56 = vsel %vm751_vm8, %v1964_v38, 0.0  ;;  %v1226_v40 = vmul.f32 1.442695, %v1214_v37 }
 0x3d4   : > { %1975 = vpow2.f32 %v1224_v36  ;;  %v1341_v47 = vsub.f32 %v2707_v16, %v1329_v14  ;;  %1244 = vadd.xlane.f32.xlu1 %v2835_v56  ;;  %v2841_v11 = vsel %vm751_vm8, %v1966_v9, 0.0  ;;  %v1331_v48 = vpop.xlane.xlu0 %1330 }
 0x3d5   : > { %1246 = vadd.xlane.f32.xlu0 %v2841_v11  ;;  %1977 = vpow2.f32 %v1226_v40  ;;  %v1342_v20 = vsub.f32 %v2715_v25, %v1331_v48 }
 0x3d6   : > { %v1968_v2 = vpop.eup %1967  ;;  %v1352_v43 = vmul.f32 1.442695, %v1341_v47 }
 0x3d7   : > { %v1970_v18 = vpop.eup %1969  ;;  %v1457_v33 = vpop.xlane.xlu1 %1456  ;;  %v2847_v49 = vsel %vm765_vm9, %v1968_v2, 0.0  ;;  %v1354_v16 = vmul.f32 1.442695, %v1342_v20 }
 0x3d8   : > { %1979 = vpow2.f32 %v1352_v43  ;;  %v1469_v0 = vsub.f32 %v2723_v50, %v1457_v33  ;;  %1372 = vadd.xlane.f32.xlu1 %v2847_v49  ;;  %v2853_v54 = vsel %vm765_vm9, %v1970_v18, 0.0  ;;  %v1459_v26 = vpop.xlane.xlu0 %1458 }
 0x3d9   : > { %1374 = vadd.xlane.f32.xlu0 %v2853_v54  ;;  %1981 = vpow2.f32 %v1354_v16  ;;  %v1470_v60 = vsub.f32 %v2736_v6, %v1459_v26 }
 0x3da   : > { %v1972_v25 = vpop.eup %1971  ;;  %v1480_v42 = vmul.f32 1.442695, %v1469_v0 }
 0x3db   : > { %v1974_v63 = vpop.eup %1973  ;;  %v1205_v15 = vpop.xlane.xlu1 %1204  ;;  %v2859_v13 = vsel %vm779_vm10, %v1972_v25, 0.0  ;;  %v1482_v50 = vmul.f32 1.442695, %v1470_v60 }
 0x3dc   : > { %1983 = vpow2.f32 %v1480_v42  ;;  %v1215_v23 = vsub.f32 %v2746_v58, %v1205_v15  ;;  %1500 = vadd.xlane.f32.xlu1 %v2859_v13  ;;  %v2865_v7 = vsel %vm779_vm10, %v1974_v63, 0.0  ;;  %v1207_v22 = vpop.xlane.xlu0 %1206 }
 0x3dd   : > { %1502 = vadd.xlane.f32.xlu0 %v2865_v7  ;;  %1985 = vpow2.f32 %v1482_v50  ;;  %v1216_v57 = vsub.f32 %v2753_v27, %v1207_v22 }
 0x3de   : > { %v1976_v6 = vpop.eup %1975  ;;  %v1228_v5 = vmul.f32 1.442695, %v1215_v23 }
 0x3df   : > { %v1333_v8 = vpop.xlane.xlu1 %1332  ;;  %v2871_v17 = vsel %vm751_vm8, %v1976_v6, 0.0  ;;  %v1978_v58 = vpop.eup %1977  ;;  %v1230_v41 = vmul.f32 1.442695, %v1216_v57 }
 0x3e0   : > { %1987 = vpow2.f32 %v1228_v5  ;;  %v1343_v39 = vsub.f32 %v2761_v24, %v1333_v8  ;;  %1248 = vadd.xlane.f32.xlu1 %v2871_v17  ;;  %v1335_v46 = vpop.xlane.xlu0 %1334  ;;  %v2877_v28 = vsel %vm751_vm8, %v1978_v58, 0.0 }
 0x3e1   : > { %1989 = vpow2.f32 %v1230_v41  ;;  %v1344_v21 = vsub.f32 %v2768_v30, %v1335_v46  ;;  %1250 = vadd.xlane.f32.xlu0 %v2877_v28 }
 0x3e2   : > { %v1980_v55 = vpop.eup %1979  ;;  %v1356_v27 = vmul.f32 1.442695, %v1343_v39 }
 0x3e3   : > { %v1461_v38 = vpop.xlane.xlu1 %1460  ;;  %v2883_v36 = vsel %vm765_vm9, %v1980_v55, 0.0  ;;  %v1982_v24 = vpop.eup %1981  ;;  %v1358_v37 = vmul.f32 1.442695, %v1344_v21 }
 0x3e4   : > { %1991 = vpow2.f32 %v1356_v27  ;;  %v1471_v9 = vsub.f32 %v2775_v45, %v1461_v38  ;;  %1376 = vadd.xlane.f32.xlu1 %v2883_v36  ;;  %v1463_v14 = vpop.xlane.xlu0 %1462  ;;  %v2889_v40 = vsel %vm765_vm9, %v1982_v24, 0.0 }
 0x3e5   : > { %1993 = vpow2.f32 %v1358_v37  ;;  %v1472_v48 = vsub.f32 %v2783_v29, %v1463_v14  ;;  %1378 = vadd.xlane.f32.xlu0 %v2889_v40 }
 0x3e6   : > { %v1984_v30 = vpop.eup %1983  ;;  %v1484_v47 = vmul.f32 1.442695, %v1471_v9 }
 0x3e7   : > { %v1209_v2 = vpop.xlane.xlu1 %1208  ;;  %v2895_v43 = vsel %vm779_vm10, %v1984_v30, 0.0  ;;  %v1986_v45 = vpop.eup %1985  ;;  %v1486_v20 = vmul.f32 1.442695, %v1472_v48 }
 0x3e8   : > { %1995 = vpow2.f32 %v1484_v47  ;;  %v1217_v18 = vsub.f32 %v2790_v32, %v1209_v2  ;;  %1504 = vadd.xlane.f32.xlu1 %v2895_v43  ;;  %v2901_v33 = vsel %vm779_vm10, %v1986_v45, 0.0 }
 0x3e9   : > { %1997 = vpow2.f32 %v1486_v20  ;;  %1506 = vadd.xlane.f32.xlu0 %v2901_v33 }
 0x3ea   : > { %v1988_v16 = vpop.eup %1987  ;;  %v1232_v29 = vmul.f32 1.442695, %v1217_v18 }
 0x3eb   : > { %v1337_v0 = vpop.xlane.xlu1 %1336  ;;  %v2906_v26 = vsel %vm751_vm8, %v1988_v16, 0.0  ;;  %v1990_v25 = vpop.eup %1989 }
 0x3ec   : > { %1999 = vpow2.f32 %v1232_v29  ;;  %v1345_v32 = vsub.f32 %v2797_v4, %v1337_v0  ;;  %1252 = vadd.xlane.f32.xlu1 %v2906_v26  ;;  %v2912_v42 = vsel %vm751_vm8, %v1990_v25, 0.0 }
 0x3ed   : > { %1254 = vadd.xlane.f32.xlu0 %v2912_v42 }
 0x3ee   : > { %v1992_v60 = vpop.eup %1991  ;;  %v1360_v63 = vmul.f32 1.442695, %v1345_v32 }
 0x3ef   : > { %v1465_v15 = vpop.xlane.xlu1 %1464  ;;  %v2917_v50 = vsel %vm765_vm9, %v1992_v60, 0.0  ;;  %v1994_v23 = vpop.eup %1993 }
 0x3f0   : > { %2001 = vpow2.f32 %v1360_v63  ;;  %v1473_v22 = vsub.f32 %v2804_v52, %v1465_v15  ;;  %1380 = vadd.xlane.f32.xlu1 %v2917_v50  ;;  %v2923_v4 = vsel %vm765_vm9, %v1994_v23, 0.0 }
 0x3f1   : > { %1382 = vadd.xlane.f32.xlu0 %v2923_v4 }
 0x3f2   : > { %v1996_v6 = vpop.eup %1995  ;;  %v1488_v5 = vmul.f32 1.442695, %v1473_v22 }
 0x3f3   : > { %v2928_v57 = vsel %vm779_vm10, %v1996_v6, 0.0  ;;  %v1998_v8 = vpop.eup %1997 }
 0x3f4   : > { %2003 = vpow2.f32 %v1488_v5  ;;  %1508 = vadd.xlane.f32.xlu1 %v2928_v57  ;;  %v2933_v52 = vsel %vm779_vm10, %v1998_v8, 0.0 }
 0x3f5   : > { %1510 = vadd.xlane.f32.xlu0 %v2933_v52 }
 0x3f6   : > { %v2000_v58 = vpop.eup %1999 }
 0x3f7   : > { %v2938_v41 = vsel %vm751_vm8, %v2000_v58, 0.0 }
 0x3f8   : > { %1256 = vadd.xlane.f32.xlu1 %v2938_v41 }
 0x3fa   : > { %v2002_v39 = vpop.eup %2001 }
 0x3fb   : > { %v2943_v46 = vsel %vm765_vm9, %v2002_v39, 0.0 }
 0x3fc   : > { %1384 = vadd.xlane.f32.xlu1 %v2943_v46 }
 0x3fe   : > { %v2004_v55 = vpop.eup %2003 }
 0x3ff   : > { %v2948_v27 = vsel %vm779_vm10, %v2004_v55, 0.0 }
 0x400   : > { %1512 = vadd.xlane.f32.xlu1 %v2948_v27 }
 0x455   : > { %v1243_v21 = vpop.xlane.xlu0 %1242 }
 0x456   : > { %v1258_v38 = vmax.f32 %v1243_v21, 1e-30 }
 0x458   : > { %2005 = vrcp.f32 %v1258_v38 }
 0x459   : > { %v1371_v24 = vpop.xlane.xlu0 %1370 }
 0x45a   : > { %v1386_v37 = vmax.f32 %v1371_v24, 1e-30 }
 0x45c   : > { %2007 = vrcp.f32 %v1386_v37 }
 0x45d   : > { %v1499_v9 = vpop.xlane.xlu0 %1498 }
 0x45e   : > { %v1514_v14 = vmax.f32 %v1499_v9, 1e-30 }
 0x460   : > { %2009 = vrcp.f32 %v1514_v14 }
 0x461   : > { %v1245_v30 = vpop.xlane.xlu1 %1244 }
 0x462   : > { %v2006_v47 = vpop.eup %2005  ;;  %v1259_v48 = vmax.f32 %v1245_v30, 1e-30  ;;  %v1247_v2 = vpop.xlane.xlu0 %1246 }
 0x463   : > { %v1260_v45 = vmax.f32 %v1247_v2, 1e-30  ;;  %v1274_v20 = vmul.f32 %v2006_v47, %v2814_v31 }
 0x464   : > { %2011 = vrcp.f32 %v1259_v48 }
 0x465   : > { %2013 = vrcp.f32 %v1260_v45  ;;  %v1373_v18 = vpop.xlane.xlu1 %1372  ;;  %v1282_v60 = vmul.f32 %v1274_v20, %v2222_v59 }
 0x466   : > { %v2008_v16 = vpop.eup %2007  ;;  %v1387_v29 = vmax.f32 %v1373_v18, 1e-30  ;;  %v1375_v0 = vpop.xlane.xlu0 %1374 }
 0x467   : > { %v1402_v25 = vmul.f32 %v2008_v16, %v2821_v19  ;;  %v1388_v32 = vmax.f32 %v1375_v0, 1e-30  ;;  %v1290_v58 = vmul.f32 0.5, %v1282_v60 }
 0x468   : > { %2015 = vrcp.f32 %v1387_v29 }
 0x469   : > { %v1410_v63 = vmul.f32 %v1402_v25, %v2227_v3  ;;  %2017 = vrcp.f32 %v1388_v32  ;;  %v1501_v15 = vpop.xlane.xlu1 %1500 }
 0x46a   : > { %v2010_v23 = vpop.eup %2009  ;;  %v1515_v22 = vmax.f32 %v1501_v15, 1e-30  ;;  %v1503_v6 = vpop.xlane.xlu0 %1502 }
 0x46b   : > { %v1418_v31 = vmul.f32 0.5, %v1410_v63  ;;  %v1530_v5 = vmul.f32 %v2010_v23, %v2828_v61  ;;  %v1516_v8 = vmax.f32 %v1503_v6, 1e-30 }
 0x46c   : > { %2019 = vrcp.f32 %v1515_v22 }
 0x46d   : > { %v1538_v19 = vmul.f32 %v1530_v5, %v2243_v12  ;;  %2021 = vrcp.f32 %v1516_v8  ;;  %v1249_v39 = vpop.xlane.xlu1 %1248  ;;  %v1426_v24 = vadd.f32 %v1418_v31, %v1290_v58 }
 0x46e   : > { %v2012_v55 = vpop.eup %2011  ;;  %v1261_v21 = vmax.f32 %v1249_v39, 1e-30  ;;  %v1251_v9 = vpop.xlane.xlu0 %1250 }
 0x46f   : > { %v2014_v38 = vpop.eup %2013  ;;  %v1546_v37 = vmul.f32 0.5, %v1538_v19  ;;  %v1262_v14 = vmax.f32 %v1251_v9, 1e-30  ;;  %v1275_v47 = vmul.f32 %v2012_v55, %v2835_v56 }
 0x470   : > { %2023 = vrcp.f32 %v1261_v21  ;;  %v1276_v2 = vmul.f32 %v2014_v38, %v2841_v11 }
 0x471   : > { %v1554_v30 = vadd.f32 %v1546_v37, %v1426_v24  ;;  %v1377_v61 = vpop.xlane.xlu1 %1376  ;;  %2025 = vrcp.f32 %v1262_v14  ;;  %v1283_v25 = vmul.f32 %v1275_v47, %v2222_v59 }
 0x472   : > { %v2016_v48 = vpop.eup %2015  ;;  %v1389_v45 = vmax.f32 %v1377_v61, 1e-30  ;;  %v1379_v29 = vpop.xlane.xlu0 %1378  ;;  %v1284_v11 = vmul.f32 %v1276_v2, %v2222_v59 }
 0x473   : > { %v2018_v20 = vpop.eup %2017  ;;  %v1562_v18 = vadd.f32 %v1554_v30, %v2577_v44  ;;  %v1403_v16 = vmul.f32 %v2016_v48, %v2847_v49  ;;  %v1390_v0 = vmax.f32 %v1379_v29, 1e-30  ;;  %v1291_v8 = vmul.f32 0.5, %v1283_v25 }
 0x474   : > { %v1404_v56 = vmul.f32 %v2018_v20, %v2853_v54  ;;  %2027 = vrcp.f32 %v1389_v45  ;;  %v1292_v55 = vmul.f32 0.5, %v1284_v11 }
 0x475   : > { %1570 = vst [vmem:[%s2962_s18] sm:$0xff] %v1562_v18  ;;  %v1411_v32 = vmul.f32 %v1403_v16, %v2227_v3  ;;  %v1505_v60 = vpop.xlane.xlu1 %1504  ;;  %2029 = vrcp.f32 %v1390_v0 }
 0x476   : > { %v2020_v63 = vpop.eup %2019  ;;  %v1412_v15 = vmul.f32 %v1404_v56, %v2227_v3  ;;  %v1517_v44 = vmax.f32 %v1505_v60, 1e-30  ;;  %v1507_v54 = vpop.xlane.xlu0 %1506 }
 0x477   : > { %v2022_v23 = vpop.eup %2021  ;;  %v1419_v49 = vmul.f32 0.5, %v1411_v32  ;;  %v1531_v22 = vmul.f32 %v2020_v63, %v2859_v13  ;;  %v1518_v5 = vmax.f32 %v1507_v54, 1e-30 }
 0x478   : > { %v1420_v6 = vmul.f32 0.5, %v1412_v15  ;;  %v1532_v31 = vmul.f32 %v2022_v23, %v2865_v7  ;;  %2031 = vrcp.f32 %v1517_v44 }
 0x479   : > { %v1539_v58 = vmul.f32 %v1531_v22, %v2243_v12  ;;  %v1253_v19 = vpop.xlane.xlu1 %1252  ;;  %2033 = vrcp.f32 %v1518_v5  ;;  %v1427_v24 = vadd.f32 %v1419_v49, %v1291_v8 }
 0x47a   : > { %v2024_v39 = vpop.eup %2023  ;;  %v1540_v21 = vmul.f32 %v1532_v31, %v2243_v12  ;;  %v1263_v38 = vmax.f32 %v1253_v19, 1e-30  ;;  %v1255_v9 = vpop.xlane.xlu0 %1254  ;;  %v1428_v14 = vadd.f32 %v1420_v6, %v1292_v55 }
 0x47b   : > { %v1547_v37 = vmul.f32 0.5, %v1539_v58  ;;  %v2026_v13 = vpop.eup %2025  ;;  %v1264_v7 = vmax.f32 %v1255_v9, 1e-30  ;;  %v1277_v61 = vmul.f32 %v2024_v39, %v2871_v17 }
 0x47c   : > { %v1548_v30 = vmul.f32 0.5, %v1540_v21  ;;  %2035 = vrcp.f32 %v1263_v38  ;;  %v1278_v16 = vmul.f32 %v2026_v13, %v2877_v28 }
 0x47d   : > { %v1555_v47 = vadd.f32 %v1547_v37, %v1427_v24  ;;  %v1381_v48 = vpop.xlane.xlu1 %1380  ;;  %2037 = vrcp.f32 %v1264_v7  ;;  %v1285_v17 = vmul.f32 %v1277_v61, %v2222_v59 }
 0x47e   : > { %v2028_v2 = vpop.eup %2027  ;;  %v1556_v45 = vadd.f32 %v1548_v30, %v1428_v14  ;;  %v1391_v20 = vmax.f32 %v1381_v48, 1e-30  ;;  %v1383_v56 = vpop.xlane.xlu0 %1382  ;;  %v1286_v28 = vmul.f32 %v1278_v16, %v2222_v59 }
 0x47f   : > { %v1563_v18 = vadd.f32 %v1555_v47, %v2612_v62  ;;  %v1405_v29 = vmul.f32 %v2028_v2, %v2883_v36  ;;  %v2030_v0 = vpop.eup %2029  ;;  %v1392_v32 = vmax.f32 %v1383_v56, 1e-30  ;;  %v1293_v54 = vmul.f32 0.5, %v1285_v17 }
 0x480   : > { %v1564_v25 = vadd.f32 %v1556_v45, %v2618_v1  ;;  %2039 = vrcp.f32 %v1391_v20  ;;  %v1406_v63 = vmul.f32 %v2030_v0, %v2889_v40  ;;  %v1294_v19 = vmul.f32 0.5, %v1286_v28 }
 0x481   : > { %1571 = vst [vmem:[%s2962_s18 + $0x8] sm:$0xff] %v1563_v18  ;;  %v1413_v60 = vmul.f32 %v1405_v29, %v2227_v3  ;;  %v1509_v11 = vpop.xlane.xlu1 %1508  ;;  %2041 = vrcp.f32 %v1392_v32 }
 0x482   : > { %v2032_v15 = vpop.eup %2031  ;;  %1572 = vst [vmem:[%s2962_s18 + $0x10] sm:$0xff] %v1564_v25  ;;  %v1519_v62 = vmax.f32 %v1509_v11, 1e-30  ;;  %v1414_v44 = vmul.f32 %v1406_v63, %v2227_v3  ;;  %v1511_v23 = vpop.xlane.xlu0 %1510 }
 0x483   : > { %v1421_v36 = vmul.f32 0.5, %v1413_v60  ;;  %v1533_v1 = vmul.f32 %v2032_v15, %v2895_v43  ;;  %v2034_v49 = vpop.eup %2033  ;;  %v1520_v22 = vmax.f32 %v1511_v23, 1e-30 }
 0x484   : > { %2043 = vrcp.f32 %v1519_v62  ;;  %v1422_v6 = vmul.f32 0.5, %v1414_v44  ;;  %v1534_v31 = vmul.f32 %v2034_v49, %v2901_v33 }
 0x485   : > { %v1541_v40 = vmul.f32 %v1533_v1, %v2243_v12  ;;  %v1257_v5 = vpop.xlane.xlu1 %1256  ;;  %2045 = vrcp.f32 %v1520_v22  ;;  %v1429_v39 = vadd.f32 %v1421_v36, %v1293_v54 }
 0x486   : > { %v2036_v8 = vpop.eup %2035  ;;  %v1265_v58 = vmax.f32 %v1257_v5, 1e-30  ;;  %v1542_v21 = vmul.f32 %v1534_v31, %v2243_v12  ;;  %v1430_v38 = vadd.f32 %v1422_v6, %v1294_v19 }
 0x487   : > { %v1549_v55 = vmul.f32 0.5, %v1541_v40  ;;  %v2038_v43 = vpop.eup %2037  ;;  %v1279_v9 = vmul.f32 %v2036_v8, %v2906_v26 }
 0x488   : > { %2047 = vrcp.f32 %v1265_v58  ;;  %v1550_v37 = vmul.f32 0.5, %v1542_v21  ;;  %v1280_v47 = vmul.f32 %v2038_v43, %v2912_v42 }
 0x489   : > { %v1557_v24 = vadd.f32 %v1549_v55, %v1429_v39  ;;  %v1385_v13 = vpop.xlane.xlu1 %1384  ;;  %v1287_v45 = vmul.f32 %v1279_v9, %v2222_v59 }
 0x48a   : > { %v2040_v14 = vpop.eup %2039  ;;  %v1393_v33 = vmax.f32 %v1385_v13, 1e-30  ;;  %v1558_v7 = vadd.f32 %v1550_v37, %v1430_v38 }
 0x48b   : > { %v1565_v30 = vadd.f32 %v1557_v24, %v2667_v51  ;;  %v2042_v61 = vpop.eup %2041  ;;  %v1407_v48 = vmul.f32 %v2040_v14, %v2917_v50  ;;  %v1288_v51 = vmul.f32 %v1280_v47, %v2222_v59 }
 0x48c   : > { %2049 = vrcp.f32 %v1393_v33  ;;  %v1566_v2 = vadd.f32 %v1558_v7, %v2681_v34  ;;  %v1408_v26 = vmul.f32 %v2042_v61, %v2923_v4  ;;  %v1295_v34 = vmul.f32 0.5, %v1287_v45 }
 0x48d   : > { %1573 = vst [vmem:[%s2962_s18 + $0x18] sm:$0xff] %v1565_v30  ;;  %v1513_v20 = vpop.xlane.xlu1 %1512  ;;  %v1415_v16 = vmul.f32 %v1407_v48, %v2227_v3  ;;  %v1296_v60 = vmul.f32 0.5, %v1288_v51 }
 0x48e   : > { %v2044_v18 = vpop.eup %2043  ;;  %v1521_v29 = vmax.f32 %v1513_v20, 1e-30  ;;  %1574 = vst [vmem:[%s2962_s18 + $0x20] sm:$0xff] %v1566_v2  ;;  %v1416_v42 = vmul.f32 %v1408_v26, %v2227_v3 }
 0x48f   : > { %v1535_v50 = vmul.f32 %v2044_v18, %v2928_v57  ;;  %v2046_v56 = vpop.eup %2045  ;;  %v1423_v0 = vmul.f32 0.5, %v1415_v16 }
 0x490   : > { %2051 = vrcp.f32 %v1521_v29  ;;  %v1424_v25 = vmul.f32 0.5, %v1416_v42  ;;  %v1536_v32 = vmul.f32 %v2046_v56, %v2933_v52 }
 0x491   : > { %v1543_v4 = vmul.f32 %v1535_v50, %v2243_v12  ;;  %v1431_v63 = vadd.f32 %v1423_v0, %v1295_v34 }
 0x492   : > { %v2048_v17 = vpop.eup %2047  ;;  %v1544_v15 = vmul.f32 %v1536_v32, %v2243_v12  ;;  %v1432_v62 = vadd.f32 %v1424_v25, %v1296_v60 }
 0x493   : > { %v1551_v11 = vmul.f32 0.5, %v1543_v4  ;;  %v1281_v36 = vmul.f32 %v2048_v17, %v2938_v41 }
 0x494   : > { %v1552_v57 = vmul.f32 0.5, %v1544_v15 }
 0x495   : > { %v1559_v28 = vadd.f32 %v1551_v11, %v1431_v63  ;;  %v1289_v22 = vmul.f32 %v1281_v36, %v2222_v59 }
 0x496   : > { %v2050_v44 = vpop.eup %2049  ;;  %v1560_v23 = vadd.f32 %v1552_v57, %v1432_v62 }
 0x497   : > { %v1567_v1 = vadd.f32 %v1559_v28, %v2726_v35  ;;  %v1409_v49 = vmul.f32 %v2050_v44, %v2943_v46  ;;  %v1297_v41 = vmul.f32 0.5, %v1289_v22 }
 0x498   : > { %v1568_v52 = vadd.f32 %v1560_v23, %v2730_v53 }
 0x499   : > { %1575 = vst [vmem:[%s2962_s18 + $0x28] sm:$0xff] %v1567_v1  ;;  %v1417_v54 = vmul.f32 %v1409_v49, %v2227_v3 }
 0x49a   : > { %v2052_v6 = vpop.eup %2051  ;;  %1576 = vst [vmem:[%s2962_s18 + $0x30] sm:$0xff] %v1568_v52 }
 0x49b   : > { %v1425_v40 = vmul.f32 0.5, %v1417_v54  ;;  %v1537_v31 = vmul.f32 %v2052_v6, %v2948_v27 }
 0x49d   : > { %v1545_v5 = vmul.f32 %v1537_v31, %v2243_v12  ;;  %v1433_v35 = vadd.f32 %v1425_v40, %v1297_v41 }
 0x49f   : > { %v1553_v8 = vmul.f32 0.5, %v1545_v5 }
 0x4a1   : > { %v1561_v58 = vadd.f32 %v1553_v8, %v1433_v35 }
 0x4a3   : > { %v1569_v46 = vadd.f32 %v1561_v58, %v2778_v10 }
 0x4a5   : > { %1577 = vst [vmem:[%s2962_s18 + $0x38] sm:$0xff] %v1569_v46 }
 0x4a6 PF: > { %s15_s20 = sadd.s32 1, %s2075_s20   ;;  %s3036_s18 = smov %s2071_s19 }
 0x4a7   : > { %p12_p5 = scmp.ge.s32.totalorder %s15_s20, 4   ;;  %s3037_s19 = smov %s3039_s21 }
 0x4a9   :  { %14 = sbr.rel (!%p12_p5) target bundleno = 2 (0x2), region = 84 }

</bundles_post_ra>
